<compile_context>
chip_gen: v7x
topology: tpu7x:2x2x1
jax: 0.10.0
libtpu: 0.0.40
codegen_flags: <defaults>
</compile_context>

<pallas_src>
import jax
import jax.numpy as jnp
from jax.experimental import pallas as pl
from jax.experimental.pallas import tpu as pltpu

C = 40              # StarNet block channels
HID = 4 * C         # expansion channels inside CustomBlock
NUM_CLASSES = 10
NUM_BLOCKS = 2
BN_EPS = 1e-5

# ---- packed-parameter layout (static row offsets) ---------------------------
# bf16 weight slab, shape (WBUF_ROWS, HID); every segment starts 16-row aligned
# (bf16 sublane tile) and is stored in columns [0:width).
WA = (0, 208)        # fused dw1-pointwise @ (conv1+conv2) weight, (C, HID)
CW = (48, 256)       # conv_combined folded weight, (HID, C)
PWW2_0 = 416         # block-0 dw_conv2 pointwise(+BN) weight, (C, C)
WCLS = 464           # block-1 dw_conv2 pointwise(+BN) folded into classifier, (C, NC)
WBUF_ROWS = 512

# f32 taps/bias slab, shape (SBUF_ROWS, HID).
TAPS1 = (0, 8)       # 3 rows, width C
DWB1 = (3, 11)       # 1 row,  width C
TAPS2 = (4, 12)      # 3 rows, width C
DWB2 = (7, 15)       # 1 row,  width C
BA = (16, 17)        # fused bias, width HID
CB = (18, 19)        # conv_combined bias, width C
PWB2_0 = 20          # block-0 dw_conv2 pointwise bias, width C
BCLS = 21            # folded classifier bias, width NUM_CLASSES
SBUF_ROWS = 24


# ----------------------------- Pallas kernel --------------------------------

def _pw(x, w_bf16, b):
    """1x1 conv as a matmul over a batch tile.

    x: (NB, W, H, Cin) f32, w: (Cin, Cout) bf16, b: (1, Cout) f32.
    """
    NB, Wd, Hh, Cin = x.shape
    y = jnp.dot(x.reshape(NB * Wd * Hh, Cin).astype(jnp.bfloat16), w_bf16,
                preferred_element_type=jnp.float32) + b
    return y.reshape(NB, Wd, Hh, w_bf16.shape[1])


def _dw_1x3(pad_ref, x, taps, dwb):
    """Depthwise (1,3) conv, padding (0,1), along the W axis (axis 1).

    Uses a (NB, W+2, H, C) VMEM scratch (border rows pre-zeroed) instead of
    materializing zero-concat shifted copies.
    x: (NB, W, H, C); taps: (3, C) with taps[k, c] = torch_weight[c, 0, 0, k];
    dwb: (1, C).
    """
    Wd = x.shape[1]
    pad_ref[:, 1:Wd + 1] = x
    x_m1 = pad_ref[:, 0:Wd]          # x[w-1], zero at w=0
    x_p1 = pad_ref[:, 2:Wd + 2]      # x[w+1], zero at w=W-1
    return (x_m1 * taps[0:1, :] + x * taps[1:2, :] + x_p1 * taps[2:3, :] + dwb)


def starnet_kernel(x_ref, w_ref, s_ref, out_ref, pad_ref):
    NB, Wd, Hh, Cc = x_ref.shape      # batch-tile activation block (NB, W, H, C)
    zrow = jnp.zeros((NB, 1, Hh, Cc), jnp.float32)
    pad_ref[:, 0:1] = zrow            # zero border rows once per grid step
    pad_ref[:, Wd + 1:Wd + 2] = zrow

    a = x_ref[...]
    for blk in range(NUM_BLOCKS):     # two CustomBlocks, unrolled
        taps1 = s_ref[TAPS1[blk]:TAPS1[blk] + 3, 0:Cc]
        dwb1 = s_ref[DWB1[blk]:DWB1[blk] + 1, 0:Cc]
        w_a = w_ref[WA[blk]:WA[blk] + Cc, :]            # (C, HID) bf16
        b_a = s_ref[BA[blk]:BA[blk] + 1, :]             # (1, HID)
        cw = w_ref[CW[blk]:CW[blk] + HID, 0:Cc]         # (HID, C) bf16
        cb = s_ref[CB[blk]:CB[blk] + 1, 0:Cc]           # (1, C)
        taps2 = s_ref[TAPS2[blk]:TAPS2[blk] + 3, 0:Cc]
        dwb2 = s_ref[DWB2[blk]:DWB2[blk] + 1, 0:Cc]

        # dw_conv1 depthwise, then ONE fused matmul covering
        # dw_conv1-pointwise(+BN) composed with (conv1 + conv2), then ReLU6.
        d = _dw_1x3(pad_ref, a, taps1, dwb1)
        z = jnp.clip(_pw(d, w_a, b_a), 0.0, 6.0)
        # conv_combined (1x1 DSConv with BN, fully folded into one matmul)
        xc = _pw(z, cw, cb)
        # dw_conv2 depthwise part
        d2 = _dw_1x3(pad_ref, xc, taps2, dwb2)

        if blk < NUM_BLOCKS - 1:
            # block 0: apply dw_conv2's pointwise(+BN) to feed the next block
            pww2 = w_ref[PWW2_0:PWW2_0 + Cc, 0:Cc]
            pwb2 = s_ref[PWB2_0:PWB2_0 + 1, 0:Cc]
            a = _pw(d2, pww2, pwb2)
        else:
            # last block: pointwise commutes with the spatial mean, so pool the
            # depthwise output and apply the (pointwise(+BN) @ classifier) fold.
            pooled = jnp.mean(d2.reshape(NB, Wd * Hh, Cc), axis=1)  # (NB, C)
            wcls = w_ref[WCLS:WCLS + Cc, 0:NUM_CLASSES]             # (C, NC)
            bcls = s_ref[BCLS:BCLS + 1, 0:NUM_CLASSES]              # (1, NC)
            out_ref[...] = jnp.dot(pooled.astype(jnp.bfloat16), wcls,
                                   preferred_element_type=jnp.float32) + bcls


def starnet_forward(x_nchw, wbuf, sbuf):
    N, Cc, H, W = x_nchw.shape
    # Batch-tile size: whole batch when small, otherwise tiles of 8 images
    # (8*W*H rows keeps the matmul sublane-dense while staying tiny in VMEM).
    NB = N if N <= 8 else 8
    n_pad = (-N) % NB
    # NCHW -> (N, W, H, C).
    # TODO(synk): at scale, keep the surrounding pipeline channels-last so this
    # relayout (an extra HBM round trip comparable to this tiny kernel) disappears.
    x_nwhc = jnp.transpose(x_nchw, (0, 3, 2, 1))
    if n_pad:
        x_nwhc = jnp.pad(x_nwhc, ((0, n_pad), (0, 0), (0, 0), (0, 0)))
    n_total = N + n_pad

    out = pl.pallas_call(
        starnet_kernel,
        out_shape=jax.ShapeDtypeStruct((n_total, NUM_CLASSES), jnp.float32),
        grid_spec=pltpu.PrefetchScalarGridSpec(
            num_scalar_prefetch=0,
            grid=(n_total // NB,),
            in_specs=[
                pl.BlockSpec((NB, W, H, Cc), lambda n: (n, 0, 0, 0)),
                pl.BlockSpec((WBUF_ROWS, HID), lambda n: (0, 0)),   # fetched once
                pl.BlockSpec((SBUF_ROWS, HID), lambda n: (0, 0)),   # fetched once
            ],
            out_specs=pl.BlockSpec((NB, NUM_CLASSES), lambda n: (n, 0)),
            scratch_shapes=[pltpu.VMEM((NB, W + 2, H, Cc), jnp.float32)],
        ),
        compiler_params=pltpu.CompilerParams(
            dimension_semantics=("parallel",),
            vmem_limit_bytes=32 * 1024 * 1024,
        ),
    )(x_nwhc, wbuf, sbuf)
    return out[:N]


# --------------------- parameter init & folding (glue JAX) -------------------

def _normal(key, shape, scale=0.1):
    return scale * jax.random.normal(key, shape, dtype=jnp.float32)


def init_dsconv(key, cin, cout, kw, include_bn):
    """Shapes match torch: depthwise (cin,1,1,kw), pointwise (cout,cin,1,1)."""
    ks = jax.random.split(key, 8)
    p = {
        "dw_w": _normal(ks[0], (cin, 1, 1, kw)),
        "dw_b": _normal(ks[1], (cin,)),
        "pw_w": _normal(ks[2], (cout, cin, 1, 1)),
        "pw_b": _normal(ks[3], (cout,)),
    }
    if include_bn:
        p["gamma"] = 1.0 + _normal(ks[4], (cout,))
        p["beta"] = _normal(ks[5], (cout,))
        p["mean"] = _normal(ks[6], (cout,))
        p["var"] = 0.5 + jax.random.uniform(ks[7], (cout,), dtype=jnp.float32)
    return p


def fold_pw_bn(p):
    """Pointwise conv as (Cin,Cout) matmul weight; eval-mode BN folded in."""
    wm = p["pw_w"][:, :, 0, 0].T          # (Cin, Cout)
    b = p["pw_b"]
    if "gamma" in p:
        scale = p["gamma"] / jnp.sqrt(p["var"] + BN_EPS)
        wm = wm * scale[None, :]
        b = (b - p["mean"]) * scale + p["beta"]
    return wm, b


def fold_dw1x1_pw(p):
    """Fold a 1x1 depthwise (per-channel scale+bias) into the pointwise matmul."""
    a = p["dw_w"][:, 0, 0, 0]             # (Cin,)
    bd = p["dw_b"]                        # (Cin,)
    wm, b = fold_pw_bn(p)                 # (Cin, Cout), (Cout,)
    return a[:, None] * wm, bd @ wm + b


def raw_block_params(key):
    k = jax.random.split(key, 5)
    return {
        "dw_conv1": init_dsconv(k[0], C, C, 3, True),
        "conv1":    init_dsconv(k[1], C, HID, 1, False),
        "conv2":    init_dsconv(k[2], C, HID, 1, False),
        "comb":     init_dsconv(k[3], HID, C, 1, True),
        "dw_conv2": init_dsconv(k[4], C, C, 3, True),
    }


def fold_block(rb):
    taps1 = rb["dw_conv1"]["dw_w"][:, 0, 0, :].T            # (3, C)
    dwb1 = rb["dw_conv1"]["dw_b"][None, :]                  # (1, C)
    pww1, pwb1 = fold_pw_bn(rb["dw_conv1"])                 # (C,C), (C,)
    c1w, c1b = fold_dw1x1_pw(rb["conv1"])                   # (C,4C), (4C,)
    c2w, c2b = fold_dw1x1_pw(rb["conv2"])
    # Fuse: pre-ReLU6 = d @ (pww1 @ (c1w+c2w)) + (pwb1 @ (c1w+c2w) + c1b + c2b)
    w_a = pww1 @ (c1w + c2w)                                # (C, 4C)
    b_a = pwb1 @ (c1w + c2w) + c1b + c2b                    # (4C,)
    cw, cb = fold_dw1x1_pw(rb["comb"])                      # (4C,C), (C,)
    taps2 = rb["dw_conv2"]["dw_w"][:, 0, 0, :].T
    dwb2 = rb["dw_conv2"]["dw_b"][None, :]
    pww2, pwb2 = fold_pw_bn(rb["dw_conv2"])                 # (C,C), (C,)
    return dict(taps1=taps1, dwb1=dwb1, w_a=w_a, b_a=b_a, cw=cw, cb=cb,
                taps2=taps2, dwb2=dwb2, pww2=pww2, pwb2=pwb2)


def pack_params(fblocks, cls_weight, cls_bias):
    """Pack folded params into one bf16 weight slab and one f32 scalar slab."""
    cls_w = cls_weight.T                                    # (C, NC)
    # block 2 dw_conv2 pointwise(+BN) commutes with spatial mean -> fold into cls
    w_cls = fblocks[1]["pww2"] @ cls_w                      # (C, NC)
    b_cls = fblocks[1]["pwb2"] @ cls_w + cls_bias           # (NC,)

    def put(buf, row, arr):
        r, c = arr.shape
        return buf.at[row:row + r, 0:c].set(arr)

    wbuf = jnp.zeros((WBUF_ROWS, HID), jnp.float32)
    for i in range(NUM_BLOCKS):
        wbuf = put(wbuf, WA[i], fblocks[i]["w_a"])
        wbuf = put(wbuf, CW[i], fblocks[i]["cw"])
    wbuf = put(wbuf, PWW2_0, fblocks[0]["pww2"])
    wbuf = put(wbuf, WCLS, w_cls)
    wbuf = wbuf.astype(jnp.bfloat16)          # bf16 MXU operands, halves DMA bytes

    sbuf = jnp.zeros((SBUF_ROWS, HID), jnp.float32)
    for i in range(NUM_BLOCKS):
        sbuf = put(sbuf, TAPS1[i], fblocks[i]["taps1"])
        sbuf = put(sbuf, DWB1[i], fblocks[i]["dwb1"])
        sbuf = put(sbuf, TAPS2[i], fblocks[i]["taps2"])
        sbuf = put(sbuf, DWB2[i], fblocks[i]["dwb2"])
        sbuf = put(sbuf, BA[i], fblocks[i]["b_a"][None, :])
        sbuf = put(sbuf, CB[i], fblocks[i]["cb"][None, :])
    sbuf = put(sbuf, PWB2_0, fblocks[0]["pwb2"][None, :])
    sbuf = put(sbuf, BCLS, b_cls[None, :])
    return wbuf, sbuf


# ----------------------------- pure-JAX reference ----------------------------

def ref_dsconv(x, p, kw, include_bn):
    cin = p["dw_w"].shape[0]
    pad_w = 1 if kw == 3 else 0
    y = jax.lax.conv_general_dilated(
        x, p["dw_w"], window_strides=(1, 1),
        padding=[(0, 0), (pad_w, pad_w)],
        dimension_numbers=("NCHW", "OIHW", "NCHW"),
        feature_group_count=cin)
    y = y + p["dw_b"][None, :, None, None]
    y = jax.lax.conv_general_dilated(
        y, p["pw_w"], window_strides=(1, 1), padding=[(0, 0), (0, 0)],
        dimension_numbers=("NCHW", "OIHW", "NCHW"))
    y = y + p["pw_b"][None, :, None, None]
    if include_bn:
        scale = p["gamma"] / jnp.sqrt(p["var"] + BN_EPS)
        y = ((y - p["mean"][None, :, None, None]) * scale[None, :, None, None]
             + p["beta"][None, :, None, None])
    return y


def ref_block(x, rb):
    x = ref_dsconv(x, rb["dw_conv1"], 3, True)
    x1 = ref_dsconv(x, rb["conv1"], 1, False)
    x2 = ref_dsconv(x, rb["conv2"], 1, False)
    xc = jnp.clip(x1 + x2, 0.0, 6.0)
    xc = ref_dsconv(xc, rb["comb"], 1, True)
    return ref_dsconv(xc, rb["dw_conv2"], 3, True)


def ref_starnet(x, rb1, rb2, cls_weight, cls_bias):
    x = ref_block(x, rb1)
    x = ref_block(x, rb2)
    pooled = jnp.mean(x, axis=(2, 3))          # AdaptiveAvgPool2d((1,1)) + flatten
    return pooled @ cls_weight.T + cls_bias


# ----------------------------------- main ------------------------------------

if __name__ == "__main__":
    key = jax.random.PRNGKey(0)
    kx, kb1, kb2, kcw, kcb = jax.random.split(key, 5)

    N, H, W = 2, 8, 8
    x = jax.random.normal(kx, (N, C, H, W), dtype=jnp.float32)   # NCHW, C=40

    rb1 = raw_block_params(kb1)
    rb2 = raw_block_params(kb2)
    cls_weight = 0.1 * jax.random.normal(kcw, (NUM_CLASSES, C), dtype=jnp.float32)
    cls_bias = 0.1 * jax.random.normal(kcb, (NUM_CLASSES,), dtype=jnp.float32)

    wbuf, sbuf = pack_params([fold_block(rb1), fold_block(rb2)],
                             cls_weight, cls_bias)

    fwd = jax.jit(starnet_forward)
    out = jax.block_until_ready(fwd(x, wbuf, sbuf))

    ref = ref_starnet(x, rb1, rb2, cls_weight, cls_bias)
    assert out.shape == (N, NUM_CLASSES)
    # Tolerance widened slightly vs. the pure-f32 version because matmul
    # operands are bf16 (accumulation stays f32).
    assert jnp.allclose(out, ref, atol=2e-2, rtol=2e-2), (out, ref)

    print("KERNEL_OK")
</pallas_src>

<mosaic_0001>
module attributes {stable_mosaic.version = 11 : i64} {
  func.func @starnet_kernel(%arg0: i32, %arg1: memref<2x8x8x40xf32, #tpu.memory_space<vmem>>, %arg2: memref<512x160xbf16, #tpu.memory_space<vmem>>, %arg3: memref<24x160xf32, #tpu.memory_space<vmem>>, %arg4: memref<2x10xf32, #tpu.memory_space<vmem>>, %arg5: memref<2x10x8x40xf32, #tpu.memory_space<vmem>>) attributes {dimension_semantics = [#tpu.dimension_semantics<parallel>], iteration_bounds = array<i64: 1>, scalar_prefetch = 0 : i64, scratch_operands = 1 : i64, tpu.core_type = #tpu.core_type<tc>, window_params = [{transform_indices = @transform_0, window_bounds = array<i64: 2, 8, 8, 40>}, {pipeline_mode = #tpu.pipeline_mode<synchronous>, transform_indices = @transform_1, window_bounds = array<i64: 512, 160>}, {pipeline_mode = #tpu.pipeline_mode<synchronous>, transform_indices = @transform_2, window_bounds = array<i64: 24, 160>}, {transform_indices = @transform_3, window_bounds = array<i64: 2, 10>}]} {
    %cst = arith.constant 0.000000e+00 : f32
    %0 = vector.broadcast %cst : f32 to vector<2x1x8x40xf32>
    %c0 = arith.constant 0 : index
    %c0_0 = arith.constant 0 : index
    %c0_1 = arith.constant 0 : index
    %c0_2 = arith.constant 0 : index
    %1 = vector.load %arg5[%c0, %c0_0, %c0_1, %c0_2] : memref<2x10x8x40xf32, #tpu.memory_space<vmem>>, vector<2x1x8x40xf32>
    tpu.vector_store %arg5[%c0, %c0_0, %c0_1, %c0_2], %0 {strides = array<i32>} : memref<2x10x8x40xf32, #tpu.memory_space<vmem>>, vector<2x1x8x40xf32>,
    %c0_3 = arith.constant 0 : index
    %c9 = arith.constant 9 : index
    %c0_4 = arith.constant 0 : index
    %c0_5 = arith.constant 0 : index
    %2 = vector.load %arg5[%c0_3, %c9, %c0_4, %c0_5] : memref<2x10x8x40xf32, #tpu.memory_space<vmem>>, vector<2x1x8x40xf32>
    tpu.vector_store %arg5[%c0_3, %c9, %c0_4, %c0_5], %0 {strides = array<i32>} : memref<2x10x8x40xf32, #tpu.memory_space<vmem>>, vector<2x1x8x40xf32>,
    %c0_6 = arith.constant 0 : index
    %c0_7 = arith.constant 0 : index
    %c0_8 = arith.constant 0 : index
    %c0_9 = arith.constant 0 : index
    %3 = vector.load %arg1[%c0_6, %c0_7, %c0_8, %c0_9] : memref<2x8x8x40xf32, #tpu.memory_space<vmem>>, vector<2x8x8x40xf32>
    %c0_10 = arith.constant 0 : index
    %c0_11 = arith.constant 0 : index
    %4 = vector.load %arg3[%c0_10, %c0_11] : memref<24x160xf32, #tpu.memory_space<vmem>>, vector<3x40xf32>
    %c3 = arith.constant 3 : index
    %c0_12 = arith.constant 0 : index
    %5 = vector.load %arg3[%c3, %c0_12] : memref<24x160xf32, #tpu.memory_space<vmem>>, vector<1x40xf32>
    %c0_13 = arith.constant 0 : index
    %c0_14 = arith.constant 0 : index
    %6 = vector.load %arg2[%c0_13, %c0_14] : memref<512x160xbf16, #tpu.memory_space<vmem>>, vector<40x160xbf16>
    %c16 = arith.constant 16 : index
    %c0_15 = arith.constant 0 : index
    %7 = vector.load %arg3[%c16, %c0_15] : memref<24x160xf32, #tpu.memory_space<vmem>>, vector<1x160xf32>
    %c48 = arith.constant 48 : index
    %c0_16 = arith.constant 0 : index
    %8 = vector.load %arg2[%c48, %c0_16] : memref<512x160xbf16, #tpu.memory_space<vmem>>, vector<160x40xbf16>
    %c18 = arith.constant 18 : index
    %c0_17 = arith.constant 0 : index
    %9 = vector.load %arg3[%c18, %c0_17] : memref<24x160xf32, #tpu.memory_space<vmem>>, vector<1x40xf32>
    %c4 = arith.constant 4 : index
    %c0_18 = arith.constant 0 : index
    %10 = vector.load %arg3[%c4, %c0_18] : memref<24x160xf32, #tpu.memory_space<vmem>>, vector<3x40xf32>
    %c7 = arith.constant 7 : index
    %c0_19 = arith.constant 0 : index
    %11 = vector.load %arg3[%c7, %c0_19] : memref<24x160xf32, #tpu.memory_space<vmem>>, vector<1x40xf32>
    %c0_20 = arith.constant 0 : index
    %c1 = arith.constant 1 : index
    %c0_21 = arith.constant 0 : index
    %c0_22 = arith.constant 0 : index
    %12 = vector.load %arg5[%c0_20, %c1, %c0_21, %c0_22] : memref<2x10x8x40xf32, #tpu.memory_space<vmem>>, vector<2x8x8x40xf32>
    tpu.vector_store %arg5[%c0_20, %c1, %c0_21, %c0_22], %3 {strides = array<i32>} : memref<2x10x8x40xf32, #tpu.memory_space<vmem>>, vector<2x8x8x40xf32>,
    %c0_23 = arith.constant 0 : index
    %c0_24 = arith.constant 0 : index
    %c0_25 = arith.constant 0 : index
    %c0_26 = arith.constant 0 : index
    %13 = vector.load %arg5[%c0_23, %c0_24, %c0_25, %c0_26] : memref<2x10x8x40xf32, #tpu.memory_space<vmem>>, vector<2x8x8x40xf32>
    %c0_27 = arith.constant 0 : index
    %c2 = arith.constant 2 : index
    %c0_28 = arith.constant 0 : index
    %c0_29 = arith.constant 0 : index
    %14 = vector.load %arg5[%c0_27, %c2, %c0_28, %c0_29] : memref<2x10x8x40xf32, #tpu.memory_space<vmem>>, vector<2x8x8x40xf32>
    %15 = vector.extract_strided_slice %4 {offsets = [0, 0], sizes = [1, 40], strides = [1, 1]} : vector<3x40xf32> to vector<1x40xf32>
    %16 = vector.shape_cast %15 : vector<1x40xf32> to vector<1x1x1x40xf32>
    %17 = vector.broadcast %16 : vector<1x1x1x40xf32> to vector<2x8x8x40xf32>
    %18 = arith.mulf %13, %17 : vector<2x8x8x40xf32>
    %19 = vector.extract_strided_slice %4 {offsets = [1, 0], sizes = [1, 40], strides = [1, 1]} : vector<3x40xf32> to vector<1x40xf32>
    %20 = vector.shape_cast %19 : vector<1x40xf32> to vector<1x1x1x40xf32>
    %21 = vector.broadcast %20 : vector<1x1x1x40xf32> to vector<2x8x8x40xf32>
    %22 = arith.mulf %3, %21 : vector<2x8x8x40xf32>
    %23 = arith.addf %18, %22 : vector<2x8x8x40xf32>
    %24 = vector.extract_strided_slice %4 {offsets = [2, 0], sizes = [1, 40], strides = [1, 1]} : vector<3x40xf32> to vector<1x40xf32>
    %25 = vector.shape_cast %24 : vector<1x40xf32> to vector<1x1x1x40xf32>
    %26 = vector.broadcast %25 : vector<1x1x1x40xf32> to vector<2x8x8x40xf32>
    %27 = arith.mulf %14, %26 : vector<2x8x8x40xf32>
    %28 = arith.addf %23, %27 : vector<2x8x8x40xf32>
    %29 = vector.shape_cast %5 : vector<1x40xf32> to vector<1x1x1x40xf32>
    %30 = vector.broadcast %29 : vector<1x1x1x40xf32> to vector<2x8x8x40xf32>
    %31 = arith.addf %28, %30 : vector<2x8x8x40xf32>
    %32 = vector.shape_cast %31 : vector<2x8x8x40xf32> to vector<128x40xf32>
    %33 = arith.truncf %32 : vector<128x40xf32> to vector<128x40xbf16>
    %cst_30 = arith.constant dense<0.000000e+00> : vector<128x160xf32>
    %34 = tpu.matmul %33, %6, %cst_30 {dimension_numbers = #tpu.dot_dimension_numbers<[1], [0], [0], [1], [0, 0, 1, 1], [], []>} : vector<128x40xbf16>, vector<40x160xbf16>, vector<128x160xf32> -> vector<128x160xf32>
    %35 = vector.broadcast %7 : vector<1x160xf32> to vector<128x160xf32>
    %36 = arith.addf %34, %35 : vector<128x160xf32>
    %37 = vector.shape_cast %36 : vector<128x160xf32> to vector<2x8x8x160xf32>
    %cst_31 = arith.constant 0.000000e+00 : f32
    %cst_32 = arith.constant 6.000000e+00 : f32
    %38 = vector.broadcast %cst_31 : f32 to vector<2x8x8x160xf32>
    %39 = arith.maximumf %38, %37 : vector<2x8x8x160xf32>
    %40 = vector.broadcast %cst_32 : f32 to vector<2x8x8x160xf32>
    %41 = arith.minimumf %40, %39 : vector<2x8x8x160xf32>
    %42 = vector.shape_cast %41 : vector<2x8x8x160xf32> to vector<128x160xf32>
    %43 = arith.truncf %42 : vector<128x160xf32> to vector<128x160xbf16>
    %cst_33 = arith.constant dense<0.000000e+00> : vector<128x40xf32>
    %44 = tpu.matmul %43, %8, %cst_33 {dimension_numbers = #tpu.dot_dimension_numbers<[1], [0], [0], [1], [0, 0, 1, 1], [], []>} : vector<128x160xbf16>, vector<160x40xbf16>, vector<128x40xf32> -> vector<128x40xf32>
    %45 = vector.broadcast %9 : vector<1x40xf32> to vector<128x40xf32>
    %46 = arith.addf %44, %45 : vector<128x40xf32>
    %47 = vector.shape_cast %46 : vector<128x40xf32> to vector<2x8x8x40xf32>
    %c0_34 = arith.constant 0 : index
    %c1_35 = arith.constant 1 : index
    %c0_36 = arith.constant 0 : index
    %c0_37 = arith.constant 0 : index
    %48 = vector.load %arg5[%c0_34, %c1_35, %c0_36, %c0_37] : memref<2x10x8x40xf32, #tpu.memory_space<vmem>>, vector<2x8x8x40xf32>
    tpu.vector_store %arg5[%c0_34, %c1_35, %c0_36, %c0_37], %47 {strides = array<i32>} : memref<2x10x8x40xf32, #tpu.memory_space<vmem>>, vector<2x8x8x40xf32>,
    %c0_38 = arith.constant 0 : index
    %c0_39 = arith.constant 0 : index
    %c0_40 = arith.constant 0 : index
    %c0_41 = arith.constant 0 : index
    %49 = vector.load %arg5[%c0_38, %c0_39, %c0_40, %c0_41] : memref<2x10x8x40xf32, #tpu.memory_space<vmem>>, vector<2x8x8x40xf32>
    %c0_42 = arith.constant 0 : index
    %c2_43 = arith.constant 2 : index
    %c0_44 = arith.constant 0 : index
    %c0_45 = arith.constant 0 : index
    %50 = vector.load %arg5[%c0_42, %c2_43, %c0_44, %c0_45] : memref<2x10x8x40xf32, #tpu.memory_space<vmem>>, vector<2x8x8x40xf32>
    %51 = vector.extract_strided_slice %10 {offsets = [0, 0], sizes = [1, 40], strides = [1, 1]} : vector<3x40xf32> to vector<1x40xf32>
    %52 = vector.shape_cast %51 : vector<1x40xf32> to vector<1x1x1x40xf32>
    %53 = vector.broadcast %52 : vector<1x1x1x40xf32> to vector<2x8x8x40xf32>
    %54 = arith.mulf %49, %53 : vector<2x8x8x40xf32>
    %55 = vector.extract_strided_slice %10 {offsets = [1, 0], sizes = [1, 40], strides = [1, 1]} : vector<3x40xf32> to vector<1x40xf32>
    %56 = vector.shape_cast %55 : vector<1x40xf32> to vector<1x1x1x40xf32>
    %57 = vector.broadcast %56 : vector<1x1x1x40xf32> to vector<2x8x8x40xf32>
    %58 = arith.mulf %47, %57 : vector<2x8x8x40xf32>
    %59 = arith.addf %54, %58 : vector<2x8x8x40xf32>
    %60 = vector.extract_strided_slice %10 {offsets = [2, 0], sizes = [1, 40], strides = [1, 1]} : vector<3x40xf32> to vector<1x40xf32>
    %61 = vector.shape_cast %60 : vector<1x40xf32> to vector<1x1x1x40xf32>
    %62 = vector.broadcast %61 : vector<1x1x1x40xf32> to vector<2x8x8x40xf32>
    %63 = arith.mulf %50, %62 : vector<2x8x8x40xf32>
    %64 = arith.addf %59, %63 : vector<2x8x8x40xf32>
    %65 = vector.shape_cast %11 : vector<1x40xf32> to vector<1x1x1x40xf32>
    %66 = vector.broadcast %65 : vector<1x1x1x40xf32> to vector<2x8x8x40xf32>
    %67 = arith.addf %64, %66 : vector<2x8x8x40xf32>
    %c416 = arith.constant 416 : index
    %c0_46 = arith.constant 0 : index
    %68 = vector.load %arg2[%c416, %c0_46] : memref<512x160xbf16, #tpu.memory_space<vmem>>, vector<40x40xbf16>
    %c20 = arith.constant 20 : index
    %c0_47 = arith.constant 0 : index
    %69 = vector.load %arg3[%c20, %c0_47] : memref<24x160xf32, #tpu.memory_space<vmem>>, vector<1x40xf32>
    %70 = vector.shape_cast %67 : vector<2x8x8x40xf32> to vector<128x40xf32>
    %71 = arith.truncf %70 : vector<128x40xf32> to vector<128x40xbf16>
    %cst_48 = arith.constant dense<0.000000e+00> : vector<128x40xf32>
    %72 = tpu.matmul %71, %68, %cst_48 {dimension_numbers = #tpu.dot_dimension_numbers<[1], [0], [0], [1], [0, 0, 1, 1], [], []>} : vector<128x40xbf16>, vector<40x40xbf16>, vector<128x40xf32> -> vector<128x40xf32>
    %73 = vector.broadcast %69 : vector<1x40xf32> to vector<128x40xf32>
    %74 = arith.addf %72, %73 : vector<128x40xf32>
    %75 = vector.shape_cast %74 : vector<128x40xf32> to vector<2x8x8x40xf32>
    %c8 = arith.constant 8 : index
    %c0_49 = arith.constant 0 : index
    %76 = vector.load %arg3[%c8, %c0_49] : memref<24x160xf32, #tpu.memory_space<vmem>>, vector<3x40xf32>
    %c11 = arith.constant 11 : index
    %c0_50 = arith.constant 0 : index
    %77 = vector.load %arg3[%c11, %c0_50] : memref<24x160xf32, #tpu.memory_space<vmem>>, vector<1x40xf32>
    %c208 = arith.constant 208 : index
    %c0_51 = arith.constant 0 : index
    %78 = vector.load %arg2[%c208, %c0_51] : memref<512x160xbf16, #tpu.memory_space<vmem>>, vector<40x160xbf16>
    %c17 = arith.constant 17 : index
    %c0_52 = arith.constant 0 : index
    %79 = vector.load %arg3[%c17, %c0_52] : memref<24x160xf32, #tpu.memory_space<vmem>>, vector<1x160xf32>
    %c256 = arith.constant 256 : index
    %c0_53 = arith.constant 0 : index
    %80 = vector.load %arg2[%c256, %c0_53] : memref<512x160xbf16, #tpu.memory_space<vmem>>, vector<160x40xbf16>
    %c19 = arith.constant 19 : index
    %c0_54 = arith.constant 0 : index
    %81 = vector.load %arg3[%c19, %c0_54] : memref<24x160xf32, #tpu.memory_space<vmem>>, vector<1x40xf32>
    %c12 = arith.constant 12 : index
    %c0_55 = arith.constant 0 : index
    %82 = vector.load %arg3[%c12, %c0_55] : memref<24x160xf32, #tpu.memory_space<vmem>>, vector<3x40xf32>
    %c15 = arith.constant 15 : index
    %c0_56 = arith.constant 0 : index
    %83 = vector.load %arg3[%c15, %c0_56] : memref<24x160xf32, #tpu.memory_space<vmem>>, vector<1x40xf32>
    %c0_57 = arith.constant 0 : index
    %c1_58 = arith.constant 1 : index
    %c0_59 = arith.constant 0 : index
    %c0_60 = arith.constant 0 : index
    %84 = vector.load %arg5[%c0_57, %c1_58, %c0_59, %c0_60] : memref<2x10x8x40xf32, #tpu.memory_space<vmem>>, vector<2x8x8x40xf32>
    tpu.vector_store %arg5[%c0_57, %c1_58, %c0_59, %c0_60], %75 {strides = array<i32>} : memref<2x10x8x40xf32, #tpu.memory_space<vmem>>, vector<2x8x8x40xf32>,
    %c0_61 = arith.constant 0 : index
    %c0_62 = arith.constant 0 : index
    %c0_63 = arith.constant 0 : index
    %c0_64 = arith.constant 0 : index
    %85 = vector.load %arg5[%c0_61, %c0_62, %c0_63, %c0_64] : memref<2x10x8x40xf32, #tpu.memory_space<vmem>>, vector<2x8x8x40xf32>
    %c0_65 = arith.constant 0 : index
    %c2_66 = arith.constant 2 : index
    %c0_67 = arith.constant 0 : index
    %c0_68 = arith.constant 0 : index
    %86 = vector.load %arg5[%c0_65, %c2_66, %c0_67, %c0_68] : memref<2x10x8x40xf32, #tpu.memory_space<vmem>>, vector<2x8x8x40xf32>
    %87 = vector.extract_strided_slice %76 {offsets = [0, 0], sizes = [1, 40], strides = [1, 1]} : vector<3x40xf32> to vector<1x40xf32>
    %88 = vector.shape_cast %87 : vector<1x40xf32> to vector<1x1x1x40xf32>
    %89 = vector.broadcast %88 : vector<1x1x1x40xf32> to vector<2x8x8x40xf32>
    %90 = arith.mulf %85, %89 : vector<2x8x8x40xf32>
    %91 = vector.extract_strided_slice %76 {offsets = [1, 0], sizes = [1, 40], strides = [1, 1]} : vector<3x40xf32> to vector<1x40xf32>
    %92 = vector.shape_cast %91 : vector<1x40xf32> to vector<1x1x1x40xf32>
    %93 = vector.broadcast %92 : vector<1x1x1x40xf32> to vector<2x8x8x40xf32>
    %94 = arith.mulf %75, %93 : vector<2x8x8x40xf32>
    %95 = arith.addf %90, %94 : vector<2x8x8x40xf32>
    %96 = vector.extract_strided_slice %76 {offsets = [2, 0], sizes = [1, 40], strides = [1, 1]} : vector<3x40xf32> to vector<1x40xf32>
    %97 = vector.shape_cast %96 : vector<1x40xf32> to vector<1x1x1x40xf32>
    %98 = vector.broadcast %97 : vector<1x1x1x40xf32> to vector<2x8x8x40xf32>
    %99 = arith.mulf %86, %98 : vector<2x8x8x40xf32>
    %100 = arith.addf %95, %99 : vector<2x8x8x40xf32>
    %101 = vector.shape_cast %77 : vector<1x40xf32> to vector<1x1x1x40xf32>
    %102 = vector.broadcast %101 : vector<1x1x1x40xf32> to vector<2x8x8x40xf32>
    %103 = arith.addf %100, %102 : vector<2x8x8x40xf32>
    %104 = vector.shape_cast %103 : vector<2x8x8x40xf32> to vector<128x40xf32>
    %105 = arith.truncf %104 : vector<128x40xf32> to vector<128x40xbf16>
    %cst_69 = arith.constant dense<0.000000e+00> : vector<128x160xf32>
    %106 = tpu.matmul %105, %78, %cst_69 {dimension_numbers = #tpu.dot_dimension_numbers<[1], [0], [0], [1], [0, 0, 1, 1], [], []>} : vector<128x40xbf16>, vector<40x160xbf16>, vector<128x160xf32> -> vector<128x160xf32>
    %107 = vector.broadcast %79 : vector<1x160xf32> to vector<128x160xf32>
    %108 = arith.addf %106, %107 : vector<128x160xf32>
    %109 = vector.shape_cast %108 : vector<128x160xf32> to vector<2x8x8x160xf32>
    %cst_70 = arith.constant 0.000000e+00 : f32
    %cst_71 = arith.constant 6.000000e+00 : f32
    %110 = vector.broadcast %cst_70 : f32 to vector<2x8x8x160xf32>
    %111 = arith.maximumf %110, %109 : vector<2x8x8x160xf32>
    %112 = vector.broadcast %cst_71 : f32 to vector<2x8x8x160xf32>
    %113 = arith.minimumf %112, %111 : vector<2x8x8x160xf32>
    %114 = vector.shape_cast %113 : vector<2x8x8x160xf32> to vector<128x160xf32>
    %115 = arith.truncf %114 : vector<128x160xf32> to vector<128x160xbf16>
    %cst_72 = arith.constant dense<0.000000e+00> : vector<128x40xf32>
    %116 = tpu.matmul %115, %80, %cst_72 {dimension_numbers = #tpu.dot_dimension_numbers<[1], [0], [0], [1], [0, 0, 1, 1], [], []>} : vector<128x160xbf16>, vector<160x40xbf16>, vector<128x40xf32> -> vector<128x40xf32>
    %117 = vector.broadcast %81 : vector<1x40xf32> to vector<128x40xf32>
    %118 = arith.addf %116, %117 : vector<128x40xf32>
    %119 = vector.shape_cast %118 : vector<128x40xf32> to vector<2x8x8x40xf32>
    %c0_73 = arith.constant 0 : index
    %c1_74 = arith.constant 1 : index
    %c0_75 = arith.constant 0 : index
    %c0_76 = arith.constant 0 : index
    %120 = vector.load %arg5[%c0_73, %c1_74, %c0_75, %c0_76] : memref<2x10x8x40xf32, #tpu.memory_space<vmem>>, vector<2x8x8x40xf32>
    tpu.vector_store %arg5[%c0_73, %c1_74, %c0_75, %c0_76], %119 {strides = array<i32>} : memref<2x10x8x40xf32, #tpu.memory_space<vmem>>, vector<2x8x8x40xf32>,
    %c0_77 = arith.constant 0 : index
    %c0_78 = arith.constant 0 : index
    %c0_79 = arith.constant 0 : index
    %c0_80 = arith.constant 0 : index
    %121 = vector.load %arg5[%c0_77, %c0_78, %c0_79, %c0_80] : memref<2x10x8x40xf32, #tpu.memory_space<vmem>>, vector<2x8x8x40xf32>
    %c0_81 = arith.constant 0 : index
    %c2_82 = arith.constant 2 : index
    %c0_83 = arith.constant 0 : index
    %c0_84 = arith.constant 0 : index
    %122 = vector.load %arg5[%c0_81, %c2_82, %c0_83, %c0_84] : memref<2x10x8x40xf32, #tpu.memory_space<vmem>>, vector<2x8x8x40xf32>
    %123 = vector.extract_strided_slice %82 {offsets = [0, 0], sizes = [1, 40], strides = [1, 1]} : vector<3x40xf32> to vector<1x40xf32>
    %124 = vector.shape_cast %123 : vector<1x40xf32> to vector<1x1x1x40xf32>
    %125 = vector.broadcast %124 : vector<1x1x1x40xf32> to vector<2x8x8x40xf32>
    %126 = arith.mulf %121, %125 : vector<2x8x8x40xf32>
    %127 = vector.extract_strided_slice %82 {offsets = [1, 0], sizes = [1, 40], strides = [1, 1]} : vector<3x40xf32> to vector<1x40xf32>
    %128 = vector.shape_cast %127 : vector<1x40xf32> to vector<1x1x1x40xf32>
    %129 = vector.broadcast %128 : vector<1x1x1x40xf32> to vector<2x8x8x40xf32>
    %130 = arith.mulf %119, %129 : vector<2x8x8x40xf32>
    %131 = arith.addf %126, %130 : vector<2x8x8x40xf32>
    %132 = vector.extract_strided_slice %82 {offsets = [2, 0], sizes = [1, 40], strides = [1, 1]} : vector<3x40xf32> to vector<1x40xf32>
    %133 = vector.shape_cast %132 : vector<1x40xf32> to vector<1x1x1x40xf32>
    %134 = vector.broadcast %133 : vector<1x1x1x40xf32> to vector<2x8x8x40xf32>
    %135 = arith.mulf %122, %134 : vector<2x8x8x40xf32>
    %136 = arith.addf %131, %135 : vector<2x8x8x40xf32>
    %137 = vector.shape_cast %83 : vector<1x40xf32> to vector<1x1x1x40xf32>
    %138 = vector.broadcast %137 : vector<1x1x1x40xf32> to vector<2x8x8x40xf32>
    %139 = arith.addf %136, %138 : vector<2x8x8x40xf32>
    %140 = vector.shape_cast %139 : vector<2x8x8x40xf32> to vector<2x64x40xf32>
    %cst_85 = arith.constant dense<0.000000e+00> : vector<2x40xf32>
    %141 = vector.multi_reduction <add>, %140, %cst_85 [1] : vector<2x64x40xf32> to vector<2x40xf32>
    %cst_86 = arith.constant 6.400000e+01 : f32
    %142 = vector.broadcast %cst_86 : f32 to vector<2x40xf32>
    %143 = arith.divf %141, %142 : vector<2x40xf32>
    %c464 = arith.constant 464 : index
    %c0_87 = arith.constant 0 : index
    %144 = vector.load %arg2[%c464, %c0_87] : memref<512x160xbf16, #tpu.memory_space<vmem>>, vector<40x10xbf16>
    %c21 = arith.constant 21 : index
    %c0_88 = arith.constant 0 : index
    %145 = vector.load %arg3[%c21, %c0_88] : memref<24x160xf32, #tpu.memory_space<vmem>>, vector<1x10xf32>
    %146 = arith.truncf %143 : vector<2x40xf32> to vector<2x40xbf16>
    %cst_89 = arith.constant dense<0.000000e+00> : vector<2x10xf32>
    %147 = tpu.matmul %146, %144, %cst_89 {dimension_numbers = #tpu.dot_dimension_numbers<[1], [0], [0], [1], [0, 0, 1, 1], [], []>} : vector<2x40xbf16>, vector<40x10xbf16>, vector<2x10xf32> -> vector<2x10xf32>
    %148 = vector.broadcast %145 : vector<1x10xf32> to vector<2x10xf32>
    %149 = arith.addf %147, %148 : vector<2x10xf32>
    %c0_90 = arith.constant 0 : index
    %c0_91 = arith.constant 0 : index
    %150 = vector.load %arg4[%c0_90, %c0_91] : memref<2x10xf32, #tpu.memory_space<vmem>>, vector<2x10xf32>
    tpu.vector_store %arg4[%c0_90, %c0_91], %149 {strides = array<i32>} : memref<2x10xf32, #tpu.memory_space<vmem>>, vector<2x10xf32>,
    return
  }
  func.func @transform_0(%arg0: i32) -> (i32, i32, i32, i32) {
    %c0_i32 = arith.constant 0 : i32
    %c0_i32_0 = arith.constant 0 : i32
    %c0_i32_1 = arith.constant 0 : i32
    %c0_i32_2 = arith.constant 0 : i32
    return %arg0, %c0_i32, %c0_i32_0, %c0_i32_1 : i32, i32, i32, i32
  }
  func.func @transform_1(%arg0: i32) -> (i32, i32) {
    %c0_i32 = arith.constant 0 : i32
    %c0_i32_0 = arith.constant 0 : i32
    %c0_i32_1 = arith.constant 0 : i32
    return %c0_i32, %c0_i32_0 : i32, i32
  }
  func.func @transform_2(%arg0: i32) -> (i32, i32) {
    %c0_i32 = arith.constant 0 : i32
    %c0_i32_0 = arith.constant 0 : i32
    %c0_i32_1 = arith.constant 0 : i32
    return %c0_i32, %c0_i32_0 : i32, i32
  }
  func.func @transform_3(%arg0: i32) -> (i32, i32) {
    %c0_i32 = arith.constant 0 : i32
    %c0_i32_0 = arith.constant 0 : i32
    return %arg0, %c0_i32 : i32, i32
  }
}

</mosaic_0001>

<bundles_post_ra>
// kernel: starnet_forward.1
= control target key start
LH: loop header
LB: loop body
LE: loop exit
PB: predicated region body
PF: predicated region fallthrough
CT: control target
= control target key end

     0   :  { %v120_v1 = vlaneseq  ;;  %v2116_v3 = vmov 0   ;;  %vm16_vm0 = vcmask 326656   ;;  %v2117_v7 = vmov 0.0   ;;  %s3052_s0 = inlined_call_operand.vmem [shape: f32[2,8,8,40], index: 0, kind: input, shape index: {}]   ;;  %s3053_s1 = inlined_call_operand.vmem [shape: bf16[512,160], index: 1, kind: input, shape index: {}]   ;;  %s3054_s2 = inlined_call_operand.vmem [shape: f32[24,160], index: 2, kind: input, shape index: {}]   ;;  %s3055_s3 = inlined_call_operand.hbm [shape: f32[2,10], index: 3, kind: output, shape index: {}]  }
   0x1   :  { %v2051_v0 = vld [vmem:[%s3053_s1 + $0x4] ss:$8 sps:$4 sm:$0xff]   ;;  %v2053_v2 = vld [vmem:[%s3053_s1] ss:$8 sps:$4 sm:$0xff]   ;;  %335 = vmatprep.mubr.bf16.mxu0 %v2116_v3  ;;  %581 = vmatprep.subr.bf16.mxu1 %v2116_v3  ;;  %v2054_v4 = vld [vmem:[%s3053_s1 + $0x14] ss:$8 sps:$4 sm:$0xff]  }
   0x2   :  { %303 = vmatprep.subr.bf16.mxu0 %v2051_v0  ;;  %v2056_v5 = vld [vmem:[%s3053_s1 + $0x10] ss:$8 sps:$4 sm:$0xff]   ;;  %v44_v6 = vld [vmem:[%s3053_s1 + $0x20] sm:$0xff]  ;;  %17 = vst.msk [vmem:[#allocation2] sm:$0xff] %vm16_vm0, %v2117_v7  ;;  %v2159_v8 = vshrl.u32 %v120_v1, 7  ;;  %18 = vst.msk [vmem:[#allocation2 + $0x50] sm:$0xff] %vm16_vm0, %v2117_v7 }
   0x3   :  { %20 = vst.msk [vmem:[#allocation2 + $0x48] sm:$0xff] %vm16_vm0, %v2117_v7  ;;  %21 = vst.msk [vmem:[#allocation2 + $0x98] sm:$0xff] %vm16_vm0, %v2117_v7  ;;  %304 = vmatpush1.bf16.msra.mxu0 %v2053_v2  ;;  %v22_v9 = vld [vmem:[%s3052_s0] sm:$0xff]  ;;  %v23_v10 = vld [vmem:[%s3052_s0 + $0x8] sm:$0xff]  ;;  %v1922_v12 = vcombine.high %v44_v6, %v44_v6  ;;  %v1921_v13 = vcombine.low %v44_v6, %v44_v6  ;;  %vm296_vm1 = vcmask 1043456  }
   0x4   :  { %v24_v11 = vld [vmem:[%s3052_s0 + $0x10] sm:$0xff]  ;;  %305 = vmatprep.subr.bf16.mxu0 %v2054_v4  ;;  %v38_v14 = vld [vmem:[%s3054_s2] sm:$0x7]  ;;  %71 = vst.msk [vmem:[#allocation2 + $0x8] sm:$0xff] %vm16_vm0, %v22_v9  ;;  %72 = vst.msk [vmem:[#allocation2 + $0x10] sm:$0xff] %vm16_vm0, %v23_v10  ;;  %v2183_v15 = vsub.s32 0, %v2159_v8 }
   0x5   :  { %73 = vst.msk [vmem:[#allocation2 + $0x18] sm:$0xff] %vm16_vm0, %v24_v11  ;;  %v2186_v16 = vsub.s32 1, %v2159_v8  ;;  %v178_v17 = vsub.s32 2, %v2159_v8  ;;  %v25_v18 = vld [vmem:[%s3052_s0 + $0x18] sm:$0xff]  ;;  %v26_v19 = vld [vmem:[%s3052_s0 + $0x20] sm:$0xff]  ;;  %v27_v20 = vld [vmem:[%s3052_s0 + $0x28] sm:$0xff] }
   0x6   :  { %v2199_v21 = vrot.slane %v38_v14, %v2183_v15  ;;  %74 = vst.msk [vmem:[#allocation2 + $0x20] sm:$0xff] %vm16_vm0, %v25_v18  ;;  %75 = vst.msk [vmem:[#allocation2 + $0x28] sm:$0xff] %vm16_vm0, %v26_v19  ;;  %v2209_v23 = vld [vmem:[%s3052_s0 + $0x30] sm:$0xff]  ;;  %v2215_v24 = vld [vmem:[%s3052_s0 + $0x38] sm:$0xff]  ;;  %v298_v29 = vsel %vm296_vm1, %v1921_v13, 0 }
   0x7   :  { %v2202_v22 = vrot.slane %v38_v14, %v2186_v16  ;;  %76 = vst.msk [vmem:[#allocation2 + $0x30] sm:$0xff] %vm16_vm0, %v27_v20  ;;  %v2220_v25 = vld [vmem:[%s3052_s0 + $0x40] sm:$0xff]  ;;  %306 = vmatpush1.bf16.msra.mxu0 %v2056_v5  ;;  %77 = vst.msk [vmem:[#allocation2 + $0x38] sm:$0xff] %vm16_vm0, %v2209_v23  ;;  %v2229_v26 = vld [vmem:[%s3052_s0 + $0x48] sm:$0xff]  ;;  %v2248_v31 = vrot.slane %v38_v14, %v178_v17 }
   0x8   :  { %78 = vst.msk [vmem:[#allocation2 + $0x40] sm:$0xff] %vm16_vm0, %v2215_v24  ;;  %v2234_v27 = vld [vmem:[%s3052_s0 + $0x50] sm:$0xff]  ;;  %79 = vst.msk [vmem:[#allocation2 + $0x58] sm:$0xff] %vm16_vm0, %v2220_v25  ;;  %v2241_v28 = vld [vmem:[%s3052_s0 + $0x58] sm:$0xff]  ;;  %1923 = vmatprep.subr.msk.bf16.mxu0 %vm296_vm1, %v1922_v12 }
   0x9   :  { %v144_v30 = vmul.f32 %v2202_v22, %v22_v9  ;;  %80 = vst.msk [vmem:[#allocation2 + $0x60] sm:$0xff] %vm16_vm0, %v2229_v26  ;;  %81 = vst.msk [vmem:[#allocation2 + $0x68] sm:$0xff] %vm16_vm0, %v2234_v27  ;;  %v2257_v32 = vld [vmem:[%s3052_s0 + $0x60] sm:$0xff]  ;;  %v2264_v33 = vld [vmem:[%s3052_s0 + $0x68] sm:$0xff]  ;;  %v145_v37 = vmul.f32 %v2202_v22, %v23_v10  ;;  %v146_v42 = vmul.f32 %v2202_v22, %v24_v11 }
   0xa   :  { %82 = vst.msk [vmem:[#allocation2 + $0x70] sm:$0xff] %vm16_vm0, %v2241_v28  ;;  %v2269_v34 = vld [vmem:[%s3052_s0 + $0x70] sm:$0xff]  ;;  %v2271_v35 = vld [vmem:[#allocation2] sm:$0xff]  ;;  %83 = vst.msk [vmem:[#allocation2 + $0x78] sm:$0xff] %vm16_vm0, %v2257_v32  ;;  %v147_v43 = vmul.f32 %v2202_v22, %v25_v18  ;;  %v148_v63 = vmul.f32 %v2202_v22, %v26_v19  ;;  %v149_v0 = vmul.f32 %v2202_v22, %v27_v20 }
   0xb   :  { %84 = vst.msk [vmem:[#allocation2 + $0x80] sm:$0xff] %vm16_vm0, %v2264_v33  ;;  %85 = vst.msk [vmem:[#allocation2 + $0x88] sm:$0xff] %vm16_vm0, %v2269_v34  ;;  %v124_v36 = vmul.f32 %v2199_v21, %v2271_v35  ;;  %v2285_v38 = vld [vmem:[%s3052_s0 + $0x78] sm:$0xff]  ;;  %308 = vmatpush1.bf16.msra.mxu0 %v298_v29  ;;  %v88_v39 = vld [vmem:[#allocation2 + $0x8] sm:$0xff] }
   0xc   :  { %v104_v40 = vld [vmem:[#allocation2 + $0x10] sm:$0xff]  ;;  %v105_v41 = vld [vmem:[#allocation2 + $0x18] sm:$0xff]  ;;  %86 = vst.msk [vmem:[#allocation2 + $0x90] sm:$0xff] %vm16_vm0, %v2285_v38  ;;  %v125_v44 = vmul.f32 %v2199_v21, %v88_v39  ;;  %v2300_v49 = vld [vmem:[%s3054_s2 + $0x3] ss:$0 sm:$0xff] }
   0xd   :  { %v160_v45 = vadd.f32 %v144_v30, %v124_v36  ;;  %v180_v46 = vmul.f32 %v2248_v31, %v104_v40  ;;  %v181_v47 = vmul.f32 %v2248_v31, %v105_v41  ;;  %v2059_v48 = vld [vmem:[%s3053_s1 + $0x30] ss:$8 sps:$4 sm:$0xff]   ;;  %v106_v50 = vld [vmem:[#allocation2 + $0x20] sm:$0xff]  ;;  %v107_v51 = vld [vmem:[#allocation2 + $0x28] sm:$0xff]  ;;  %v126_v52 = vmul.f32 %v2199_v21, %v104_v40 }
   0xe   :  { %v127_v53 = vmul.f32 %v2199_v21, %v105_v41  ;;  %v161_v54 = vadd.f32 %v145_v37, %v125_v44  ;;  %v182_v56 = vmul.f32 %v2248_v31, %v106_v50  ;;  %v183_v57 = vmul.f32 %v2248_v31, %v107_v51  ;;  %582 = vmatpush1.bf16.msra.mxu1 %v2059_v48  ;;  %v2060_v1 = vld [vmem:[%s3053_s1 + $0x40] ss:$8 sps:$4 sm:$0xff]   ;;  %v108_v6 = vld [vmem:[#allocation2 + $0x30] sm:$0xff]  ;;  %v109_v9 = vld [vmem:[#allocation2 + $0x38] sm:$0xff] }
   0xf   :  { %v196_v55 = vadd.f32 %v180_v46, %v160_v45  ;;  %v162_v58 = vadd.f32 %v146_v42, %v126_v52  ;;  %583 = vmatprep.subr.bf16.mxu1 %v2116_v3  ;;  %v128_v62 = vmul.f32 %v2199_v21, %v106_v50  ;;  %v129_v10 = vmul.f32 %v2199_v21, %v107_v51  ;;  %v2061_v12 = vld [vmem:[%s3053_s1 + $0x50] ss:$8 sps:$4 sm:$0xff]   ;;  %v2062_v30 = vld [vmem:[%s3053_s1 + $0x60] ss:$8 sps:$4 sm:$0xff]  }
  0x10   :  { %v163_v59 = vadd.f32 %v147_v43, %v127_v53  ;;  %v197_v60 = vadd.f32 %v181_v47, %v161_v54  ;;  %v184_v13 = vmul.f32 %v2248_v31, %v108_v6  ;;  %v185_v14 = vmul.f32 %v2248_v31, %v109_v9  ;;  %v110_v36 = vld [vmem:[#allocation2 + $0x40] sm:$0xff]  ;;  %v2329_v37 = vld [vmem:[#allocation2 + $0x48] sm:$0xff]  ;;  %v2063_v46 = vld [vmem:[%s3053_s1 + $0x70] ss:$8 sps:$4 sm:$0xff]  }
  0x11   :  { %v212_v61 = vadd.f32 %v196_v55, %v2300_v49  ;;  %v198_v4 = vadd.f32 %v182_v56, %v162_v58  ;;  %v164_v20 = vadd.f32 %v148_v63, %v128_v62  ;;  %v165_v29 = vadd.f32 %v149_v0, %v129_v10  ;;  %v2341_v47 = vld [vmem:[#allocation2 + $0x50] sm:$0xff]  ;;  %v2064_v54 = vld [vmem:[%s3053_s1 + $0x80] ss:$8 sps:$4 sm:$0xff]  }
  0x12   :  { %v213_v2 = vadd.f32 %v197_v60, %v2300_v49  ;;  %v199_v5 = vadd.f32 %v183_v57, %v163_v59  ;;  %584 = vmatpush1.bf16.msra.mxu1 %v2060_v1  ;;  %v130_v39 = vmul.f32 %v2199_v21, %v108_v6  ;;  %v150_v40 = vmul.f32 %v2202_v22, %v2209_v23  ;;  %v112_v55 = vld [vmem:[#allocation2 + $0x60] sm:$0xff]  ;;  %v113_v56 = vld [vmem:[#allocation2 + $0x68] sm:$0xff]  ;;  %v2065_v0 = vld [vmem:[%s3053_s1 + $0x90] ss:$8 sps:$4 sm:$0xff]  }
  0x13   :  { %585 = vmatprep.subr.bf16.mxu1 %v2116_v3  ;;  %v214_v18 = vadd.f32 %v198_v4, %v2300_v49  ;;  %v151_v41 = vmul.f32 %v2202_v22, %v2215_v24  ;;  %v200_v43 = vadd.f32 %v184_v13, %v164_v20  ;;  %v201_v44 = vadd.f32 %v185_v14, %v165_v29  ;;  %v96_v24 = vld [vmem:[#allocation2 + $0x58] sm:$0xff] }
  0x14   :  { %v228_v11 = vpack.c.bf16 %v213_v2, %v212_v61  ;;  %v215_v19 = vadd.f32 %v199_v5, %v2300_v49  ;;  %v131_v45 = vmul.f32 %v2199_v21, %v109_v9  ;;  %v186_v48 = vmul.f32 %v2248_v31, %v110_v36 }
  0x15   :  { %v187_v23 = vmul.f32 %v2248_v31, %v2329_v37  ;;  %v216_v50 = vadd.f32 %v200_v43, %v2300_v49  ;;  %v217_v51 = vadd.f32 %v201_v44, %v2300_v49  ;;  %v166_v52 = vadd.f32 %v150_v40, %v130_v39 }
  0x16   :  { %1924 = vmatmul.mubr.msk.bf16.vlgmr.msra.gmra.mrb[0].mxu0 %vm16_vm0, %v228_v11  ;;  %586 = vmatpush1.bf16.msra.mxu1 %v2061_v12  ;;  %v229_v42 = vpack.c.bf16 %v215_v19, %v214_v18  ;;  %v167_v53 = vadd.f32 %v151_v41, %v131_v45  ;;  %v132_v57 = vmul.f32 %v2199_v21, %v2341_v47 }
  0x17   :  { %345 = vmatprep.mubr.bf16.mxu0 %v2116_v3  ;;  %587 = vmatprep.subr.bf16.mxu1 %v2116_v3  ;;  %v152_v58 = vmul.f32 %v2202_v22, %v2220_v25  ;;  %v153_v59 = vmul.f32 %v2202_v22, %v2229_v26  ;;  %v230_v60 = vpack.c.bf16 %v217_v51, %v216_v50 }
  0x18   :  { %v202_v61 = vadd.f32 %v186_v48, %v166_v52  ;;  %v203_v62 = vadd.f32 %v187_v23, %v167_v53  ;;  %v133_v63 = vmul.f32 %v2199_v21, %v96_v24 }
  0x1a   :  { %588 = vmatpush1.bf16.msra.mxu1 %v2062_v30 }
  0x1b   :  { %589 = vmatprep.subr.bf16.mxu1 %v2116_v3 }
  0x1e   :  { %1925 = vmatmul.mubr.msk.bf16.gmra.mrb[4].mxu0 %vm16_vm0, %v229_v42  ;;  %590 = vmatpush1.bf16.msra.mxu1 %v2063_v46 }
  0x1f   :  { %355 = vmatprep.mubr.bf16.mxu0 %v2116_v3  ;;  %591 = vmatprep.subr.bf16.mxu1 %v2116_v3 }
  0x22   :  { %592 = vmatpush1.bf16.msra.mxu1 %v2064_v54 }
  0x23   :  { %8 = vsyncpa [#allocation4], 0  ;;  %v168_v1 = vadd.f32 %v152_v58, %v132_v57  ;;  %v188_v2 = vmul.f32 %v2248_v31, %v112_v55  ;;  %593 = vmatprep.subr.bf16.mxu1 %v2116_v3  ;;  %v218_v25 = vadd.f32 %v202_v61, %v2300_v49  ;;  %v219_v26 = vadd.f32 %v203_v62, %v2300_v49  ;;  %v114_v13 = vld [vmem:[#allocation2 + $0x70] sm:$0xff]  ;;  %v115_v19 = vld [vmem:[#allocation2 + $0x78] sm:$0xff]  ;;  %s2119_s4 = smov [#allocation3]  }
  0x24   :  { %v169_v4 = vadd.f32 %v153_v59, %v133_v63  ;;  %v189_v5 = vmul.f32 %v2248_v31, %v113_v56  ;;  %v154_v9 = vmul.f32 %v2202_v22, %v2234_v27  ;;  %v155_v10 = vmul.f32 %v2202_v22, %v2241_v28  ;;  %v116_v45 = vld [vmem:[#allocation2 + $0x80] sm:$0xff]  ;;  %v117_v46 = vld [vmem:[#allocation2 + $0x88] sm:$0xff]  ;;  %v118_v58 = vld [vmem:[#allocation2 + $0x90] sm:$0xff]  ;;  %s1908_s5 = sshll.u32 %s2119_s4, 4  ;;  %s1909_s5 = int_to_ptr.vmem [resolvable:$true] %s1908_s5 }
  0x25   :  { %v204_v6 = vadd.f32 %v188_v2, %v168_v1  ;;  %v231_v11 = vpack.c.bf16 %v219_v26, %v218_v25  ;;  %v134_v14 = vmul.f32 %v2199_v21, %v112_v55  ;;  %v135_v18 = vmul.f32 %v2199_v21, %v113_v56  ;;  %s2092_s6 = scalar_lea.vmem %s1909_s5, 32  ;;  %p2097_p1 = scmp.lt.s32.totalorder %s1909_s5, %s1909_s5 }
  0x26   :  { %1926 = vmatmul.mubr.msk.bf16.gmra.mrb[8].mxu0 %vm16_vm0, %v230_v60  ;;  %594 = vmatpush1.bf16.msra.mxu1 %v2065_v0  ;;  %v205_v12 = vadd.f32 %v189_v5, %v169_v4  ;;  %v190_v29 = vmul.f32 %v2248_v31, %v114_v13  ;;  %v191_v36 = vmul.f32 %v2248_v31, %v115_v19  ;;  %v2403_v60 = vld [vmem:[#allocation2 + $0x98] sm:$0xff]  ;;  %v2069_v5 = vld [vmem:[%s3053_s1 + $0x1a0] ss:$8 sps:$4 sm:$0xff]   ;;  %vm556_vm2 = vcmask 261120   ;;  %p2093_p0 = scmp.ne.s32.totalorder %s1909_s5, %s2092_s6  ;;  %p2098_p2 = scmp.lt.s32.totalorder %s2092_s6, %s2092_s6 }
  0x27   :  { %365 = vmatprep.mubr.bf16.mxu0 %v2116_v3  ;;  %595 = vmatprep.subr.bf16.mxu1 %v2116_v3  ;;  %v220_v20 = vadd.f32 %v204_v6, %v2300_v49  ;;  %v170_v30 = vadd.f32 %v154_v9, %v134_v14  ;;  %v171_v28 = vadd.f32 %v155_v10, %v135_v18  ;;  %v2067_v4 = vld [vmem:[%s3053_s1 + $0xb0] ss:$8 sps:$4 sm:$0xff]   ;;  %v1916_v9 = vld [vmem:[%s3054_s2 + $0x20] ss:$8 sm:$0x3]  ;;  %vm2118_vm3 = vmmov 0  }
  0x28   :  { %v221_v27 = vadd.f32 %v205_v12, %v2300_v49  ;;  %v136_v39 = vmul.f32 %v2199_v21, %v114_v13  ;;  %v156_v40 = vmul.f32 %v2202_v22, %v2257_v32  ;;  %v157_v41 = vmul.f32 %v2202_v22, %v2264_v33  ;;  %v2070_v6 = vld [vmem:[%s3053_s1 + $0x1b0] ss:$8 sps:$4 sm:$0xff]   ;;  %2014 = vmatprep.subr.bf16.mxu0 %v2069_v5  ;;  %p2099_p3 = por %p2098_p2, %p2097_p1 }
  0x29   :  { %v206_v43 = vadd.f32 %v190_v29, %v170_v30  ;;  %v207_v44 = vadd.f32 %v191_v36, %v171_v28  ;;  %v137_v48 = vmul.f32 %v2199_v21, %v115_v19  ;;  %v192_v23 = vmul.f32 %v2248_v31, %v116_v45  ;;  %2015 = vmatpush3.bf16.msra.mxu0 %v2069_v5 }
  0x2a   :  { %v232_v42 = vpack.c.bf16 %v221_v27, %v220_v20  ;;  %v193_v24 = vmul.f32 %v2248_v31, %v117_v46  ;;  %v172_v51 = vadd.f32 %v156_v40, %v136_v39  ;;  %v138_v33 = vmul.f32 %v2199_v21, %v116_v45  ;;  %2016 = vmatprep.subr.bf16.mxu0 %v2070_v6  ;;  %p2100_p4 = pnand %p2099_p3, %p2093_p0 }
  0x2b   :  { %v222_v50 = vadd.f32 %v206_v43, %v2300_v49  ;;  %v223_v32 = vadd.f32 %v207_v44, %v2300_v49  ;;  %v173_v52 = vadd.f32 %v157_v41, %v137_v48  ;;  %v139_v53 = vmul.f32 %v2199_v21, %v117_v46 }
  0x2c   :  { %v158_v54 = vmul.f32 %v2202_v22, %v2269_v34  ;;  %v208_v56 = vadd.f32 %v192_v23, %v172_v51  ;;  %v159_v59 = vmul.f32 %v2202_v22, %v2285_v38  ;;  %v194_v62 = vmul.f32 %v2248_v31, %v118_v58 }
  0x2d   :  { %v233_v55 = vpack.c.bf16 %v223_v32, %v222_v50  ;;  %v209_v57 = vadd.f32 %v193_v24, %v173_v52  ;;  %v195_v34 = vmul.f32 %v2248_v31, %v2403_v60  ;;  %v2066_v31 = vld [vmem:[%s3053_s1 + $0xa0] ss:$8 sps:$4 sm:$0xff]   ;;  %2017 = vmatpush3.bf16.msra.mxu0 %v2070_v6  ;;  %v2438_v10 = vrot.slane %v1916_v9, %v2183_v15 }
  0x2e   :  { %1927 = vmatmul.mubr.msk.bf16.gmra.mrb[12].mxu0 %vm16_vm0, %v231_v11  ;;  %v174_v61 = vadd.f32 %v158_v54, %v138_v33  ;;  %v224_v63 = vadd.f32 %v208_v56, %v2300_v49  ;;  %v175_v0 = vadd.f32 %v159_v59, %v139_v53  ;;  %596 = vmatpush1.bf16.msra.mxu1 %v2066_v31  ;;  %vm1836_vm4 = vcmask 1041409  }
  0x2f   :  { %375 = vmatprep.mubr.bf16.mxu0 %v2116_v3  ;;  %v225_v21 = vadd.f32 %v209_v57, %v2300_v49  ;;  %597 = vmatprep.subr.bf16.mxu1 %v2116_v3  ;;  %v2441_v11 = vrot.slane %v1916_v9, %v2186_v16  ;;  %vm1900_vm5 = vcmask 74752  }
  0x30   :  { %v210_v2 = vadd.f32 %v194_v62, %v174_v61  ;;  %v211_v22 = vadd.f32 %v195_v34, %v175_v0 }
  0x31   :  { %v234_v1 = vpack.c.bf16 %v225_v21, %v224_v63 }
  0x32   :  { %v226_v38 = vadd.f32 %v210_v2, %v2300_v49  ;;  %v227_v25 = vadd.f32 %v211_v22, %v2300_v49  ;;  %598 = vmatpush1.bf16.msra.mxu1 %v2067_v4  ;;  %v2068_v49 = vld [vmem:[%s3053_s1 + $0xc0] ss:$8 sps:$4 sm:$0xff]  }
  0x33   :  { %599 = vmatprep.subr.bf16.mxu1 %v2116_v3 }
  0x34   :  { %v235_v26 = vpack.c.bf16 %v227_v25, %v226_v38 }
  0x36   :  { %1928 = vmatmul.mubr.msk.bf16.gmra.mrb[16].mxu0 %vm16_vm0, %v232_v42  ;;  %600 = vmatpush1.bf16.msra.mxu1 %v2068_v49 }
  0x37   :  { %385 = vmatprep.mubr.bf16.mxu0 %v2116_v3 }
  0x3e   :  { %1929 = vmatmul.mubr.msk.bf16.gmra.mrb[20].mxu0 %vm16_vm0, %v233_v55 }
  0x3f   :  { %395 = vmatprep.mubr.bf16.mxu0 %v2116_v3 }
  0x46   :  { %1930 = vmatmul.mubr.msk.bf16.gmra.mrb[24].mxu0 %vm16_vm0, %v234_v1 }
  0x47   :  { %405 = vmatprep.mubr.bf16.mxu0 %v2116_v3 }
  0x4e   :  { %1931 = vmatmul.mubr.msk.bf16.gmra.mrb[28].mxu0 %vm16_vm0, %v235_v26 }
  0xe9   :  { %v337_v12 = vpop.f32.mrb[0].mxu0 }
  0xea   :  { %v338_v13 = vadd.f32 %v337_v12, %v2438_v10  ;;  %v339_v14 = vpop.f32.mrb[1].mxu0 }
  0xeb   :  { %v340_v18 = vadd.f32 %v339_v14, %v2441_v11  ;;  %v341_v19 = vpop.f32.mrb[2].mxu0 }
  0xec   :  { %v416_v20 = vmax.f32 %v338_v13, 0.0  ;;  %v342_v29 = vadd.f32 %v341_v19, %v2438_v10  ;;  %v343_v27 = vpop.f32.mrb[3].mxu0 }
  0xed   :  { %v417_v30 = vmax.f32 %v340_v18, 0.0  ;;  %v344_v28 = vadd.f32 %v343_v27, %v2441_v11 }
  0xee   :  { %v418_v36 = vmax.f32 %v342_v29, 0.0  ;;  %v448_v40 = vmin.f32 %v416_v20, 6.0 }
  0xef   :  { %v419_v39 = vmax.f32 %v344_v28, 0.0  ;;  %v449_v42 = vmin.f32 %v417_v30, 6.0 }
  0xf0   :  { %v450_v41 = vmin.f32 %v418_v36, 6.0 }
  0xf1   :  { %v451_v43 = vmin.f32 %v419_v39, 6.0  ;;  %v347_v44 = vpop.f32.mrb[4].mxu0 }
  0xf2   :  { %v480_v45 = vpack.c.bf16 %v450_v41, %v448_v40  ;;  %v348_v46 = vadd.f32 %v347_v44, %v2438_v10  ;;  %v349_v48 = vpop.f32.mrb[5].mxu0 }
  0xf3   :  { %v350_v23 = vadd.f32 %v349_v48, %v2441_v11  ;;  %v351_v24 = vpop.f32.mrb[6].mxu0  ;;  %v481_v50 = vpack.c.bf16 %v451_v43, %v449_v42 }
  0xf4   :  { %v420_v32 = vmax.f32 %v348_v46, 0.0  ;;  %v352_v51 = vadd.f32 %v351_v24, %v2438_v10  ;;  %v353_v52 = vpop.f32.mrb[7].mxu0 }
  0xf5   :  { %v421_v33 = vmax.f32 %v350_v23, 0.0  ;;  %v354_v53 = vadd.f32 %v353_v52, %v2441_v11  ;;  %1942 = vmatprep.mubr.msk.bf16.mxu1 %vm556_vm2, %v481_v50 }
  0xf6   :  { %v422_v54 = vmax.f32 %v352_v51, 0.0  ;;  %614 = vmatmul.mubr.bf16.vlgmr.msra.gmra.mrb[0].mxu1 %v480_v45  ;;  %v452_v56 = vmin.f32 %v420_v32, 6.0 }
  0xf7   :  { %v423_v55 = vmax.f32 %v354_v53, 0.0  ;;  %v453_v58 = vmin.f32 %v421_v33, 6.0 }
  0xf8   :  { %v454_v57 = vmin.f32 %v422_v54, 6.0 }
  0xf9   :  { %v455_v59 = vmin.f32 %v423_v55, 6.0  ;;  %v357_v61 = vpop.f32.mrb[8].mxu0 }
  0xfa   :  { %v482_v62 = vpack.c.bf16 %v454_v57, %v452_v56  ;;  %v358_v63 = vadd.f32 %v357_v61, %v2438_v10  ;;  %v359_v21 = vpop.f32.mrb[9].mxu0 }
  0xfb   :  { %v483_v0 = vpack.c.bf16 %v455_v59, %v453_v58  ;;  %v360_v34 = vadd.f32 %v359_v21, %v2441_v11  ;;  %v361_v1 = vpop.f32.mrb[10].mxu0 }
  0xfc   :  { %v424_v2 = vmax.f32 %v358_v63, 0.0  ;;  %v362_v22 = vadd.f32 %v361_v1, %v2438_v10  ;;  %v363_v38 = vpop.f32.mrb[11].mxu0 }
  0xfd   :  { %v425_v25 = vmax.f32 %v360_v34, 0.0  ;;  %v364_v26 = vadd.f32 %v363_v38, %v2441_v11  ;;  %1943 = vmatprep.mubr.msk.bf16.mxu1 %vm556_vm2, %v483_v0 }
  0xfe   :  { %v426_v31 = vmax.f32 %v362_v22, 0.0  ;;  %622 = vmatmul.mubr.bf16.gmra.mrb[4].mxu1 %v482_v62  ;;  %v456_v49 = vmin.f32 %v424_v2, 6.0 }
  0xff   :  { %v427_v4 = vmax.f32 %v364_v26, 0.0  ;;  %v457_v6 = vmin.f32 %v425_v25, 6.0 }
 0x100   :  { %v458_v5 = vmin.f32 %v426_v31, 6.0 }
 0x101   :  { %v459_v9 = vmin.f32 %v427_v4, 6.0  ;;  %v367_v12 = vpop.f32.mrb[12].mxu0 }
 0x102   :  { %v484_v13 = vpack.c.bf16 %v458_v5, %v456_v49  ;;  %v368_v14 = vadd.f32 %v367_v12, %v2438_v10  ;;  %v369_v18 = vpop.f32.mrb[13].mxu0 }
 0x103   :  { %v485_v19 = vpack.c.bf16 %v459_v9, %v457_v6  ;;  %v370_v20 = vadd.f32 %v369_v18, %v2441_v11  ;;  %v371_v29 = vpop.f32.mrb[14].mxu0 }
 0x104   :  { %v428_v27 = vmax.f32 %v368_v14, 0.0  ;;  %v372_v30 = vadd.f32 %v371_v29, %v2438_v10  ;;  %v373_v28 = vpop.f32.mrb[15].mxu0 }
 0x105   :  { %v429_v36 = vmax.f32 %v370_v20, 0.0  ;;  %v374_v39 = vadd.f32 %v373_v28, %v2441_v11  ;;  %1944 = vmatprep.mubr.msk.bf16.mxu1 %vm556_vm2, %v485_v19 }
 0x106   :  { %v430_v40 = vmax.f32 %v372_v30, 0.0  ;;  %630 = vmatmul.mubr.bf16.gmra.mrb[8].mxu1 %v484_v13  ;;  %v460_v42 = vmin.f32 %v428_v27, 6.0 }
 0x107   :  { %v431_v41 = vmax.f32 %v374_v39, 0.0  ;;  %v461_v44 = vmin.f32 %v429_v36, 6.0 }
 0x108   :  { %v462_v43 = vmin.f32 %v430_v40, 6.0 }
 0x109   :  { %v463_v45 = vmin.f32 %v431_v41, 6.0  ;;  %v377_v46 = vpop.f32.mrb[16].mxu0 }
 0x10a   :  { %v486_v48 = vpack.c.bf16 %v462_v43, %v460_v42  ;;  %v378_v23 = vadd.f32 %v377_v46, %v2438_v10  ;;  %v379_v24 = vpop.f32.mrb[17].mxu0 }
 0x10b   :  { %v487_v50 = vpack.c.bf16 %v463_v45, %v461_v44  ;;  %v380_v32 = vadd.f32 %v379_v24, %v2441_v11  ;;  %v381_v51 = vpop.f32.mrb[18].mxu0 }
 0x10c   :  { %v432_v52 = vmax.f32 %v378_v23, 0.0  ;;  %v382_v33 = vadd.f32 %v381_v51, %v2438_v10  ;;  %v383_v53 = vpop.f32.mrb[19].mxu0 }
 0x10d   :  { %v433_v54 = vmax.f32 %v380_v32, 0.0  ;;  %v384_v55 = vadd.f32 %v383_v53, %v2441_v11  ;;  %1945 = vmatprep.mubr.msk.bf16.mxu1 %vm556_vm2, %v487_v50 }
 0x10e   :  { %v434_v56 = vmax.f32 %v382_v33, 0.0  ;;  %638 = vmatmul.mubr.bf16.gmra.mrb[12].mxu1 %v486_v48  ;;  %v464_v58 = vmin.f32 %v432_v52, 6.0 }
 0x10f   :  { %v435_v57 = vmax.f32 %v384_v55, 0.0  ;;  %v465_v61 = vmin.f32 %v433_v54, 6.0 }
 0x110   :  { %v466_v59 = vmin.f32 %v434_v56, 6.0 }
 0x111   :  { %v467_v62 = vmin.f32 %v435_v57, 6.0  ;;  %v387_v63 = vpop.f32.mrb[20].mxu0 }
 0x112   :  { %v488_v21 = vpack.c.bf16 %v466_v59, %v464_v58  ;;  %v388_v0 = vadd.f32 %v387_v63, %v2438_v10  ;;  %v389_v34 = vpop.f32.mrb[21].mxu0 }
 0x113   :  { %v489_v1 = vpack.c.bf16 %v467_v62, %v465_v61  ;;  %v390_v2 = vadd.f32 %v389_v34, %v2441_v11  ;;  %v391_v22 = vpop.f32.mrb[22].mxu0 }
 0x114   :  { %v436_v38 = vmax.f32 %v388_v0, 0.0  ;;  %v392_v25 = vadd.f32 %v391_v22, %v2438_v10  ;;  %v393_v26 = vpop.f32.mrb[23].mxu0  ;;  %v2077_v22 = vld [vmem:[%s3053_s1 + $0xe4] ss:$8 sps:$4 sm:$0xff]  }
 0x115   :  { %v437_v31 = vmax.f32 %v390_v2, 0.0  ;;  %v394_v4 = vadd.f32 %v393_v26, %v2441_v11  ;;  %1946 = vmatprep.mubr.msk.bf16.mxu1 %vm556_vm2, %v489_v1  ;;  %v2072_v1 = vld [vmem:[%s3053_s1 + $0xd0] ss:$8 sps:$4 sm:$0xff]   ;;  %v2074_v2 = vld [vmem:[%s3053_s1 + $0xd4] ss:$8 sps:$4 sm:$0xff]  }
 0x116   :  { %v438_v49 = vmax.f32 %v392_v25, 0.0  ;;  %646 = vmatmul.mubr.bf16.gmra.mrb[16].mxu1 %v488_v21  ;;  %v468_v6 = vmin.f32 %v436_v38, 6.0  ;;  %1249 = vmatprep.subr.bf16.mxu1 %v2074_v2  ;;  %v2075_v38 = vld [vmem:[%s3053_s1 + $0xe0] ss:$8 sps:$4 sm:$0xff]  }
 0x117   :  { %v439_v5 = vmax.f32 %v394_v4, 0.0  ;;  %v469_v12 = vmin.f32 %v437_v31, 6.0  ;;  %1250 = vmatpush1.bf16.msra.mxu1 %v2072_v1  ;;  %v2505_v25 = vld [vmem:[%s3054_s2 + $0x22] ss:$0 sm:$0xff] }
 0x118   :  { %v470_v9 = vmin.f32 %v438_v49, 6.0  ;;  %1251 = vmatprep.subr.bf16.mxu1 %v2077_v22 }
 0x119   :  { %v471_v13 = vmin.f32 %v439_v5, 6.0  ;;  %v397_v14 = vpop.f32.mrb[24].mxu0 }
 0x11a   :  { %v490_v18 = vpack.c.bf16 %v470_v9, %v468_v6  ;;  %v398_v19 = vadd.f32 %v397_v14, %v2438_v10  ;;  %v399_v20 = vpop.f32.mrb[25].mxu0  ;;  %v728_v9 = vsub.s32 4, %v2159_v8  ;;  %v784_v14 = vsub.s32 6, %v2159_v8 }
 0x11b   :  { %v491_v29 = vpack.c.bf16 %v471_v13, %v469_v12  ;;  %v400_v27 = vadd.f32 %v399_v20, %v2441_v11  ;;  %v401_v30 = vpop.f32.mrb[26].mxu0  ;;  %1252 = vmatpush1.bf16.msra.mxu1 %v2075_v38  ;;  %v748_v12 = vsub.s32 5, %v2159_v8  ;;  %v68_v13 = vld [vmem:[%s3054_s2] sm:$0x70] }
 0x11c   :  { %v440_v28 = vmax.f32 %v398_v19, 0.0  ;;  %v402_v36 = vadd.f32 %v401_v30, %v2438_v10  ;;  %v403_v39 = vpop.f32.mrb[27].mxu0  ;;  %v2519_v19 = vrot.slane %v68_v13, %v728_v9 }
 0x11d   :  { %v441_v40 = vmax.f32 %v400_v27, 0.0  ;;  %v404_v41 = vadd.f32 %v403_v39, %v2441_v11  ;;  %1947 = vmatprep.mubr.msk.bf16.mxu1 %vm556_vm2, %v491_v29  ;;  %v2523_v20 = vrot.slane %v68_v13, %v748_v12 }
 0x11e   :  { %v442_v42 = vmax.f32 %v402_v36, 0.0  ;;  %654 = vmatmul.mubr.bf16.gmra.mrb[20].mxu1 %v490_v18  ;;  %v472_v44 = vmin.f32 %v440_v28, 6.0  ;;  %v2528_v28 = vrot.slane %v68_v13, %v784_v14 }
 0x11f   :  { %v443_v43 = vmax.f32 %v404_v41, 0.0  ;;  %v473_v46 = vmin.f32 %v441_v40, 6.0 }
 0x120   :  { %v474_v45 = vmin.f32 %v442_v42, 6.0  ;;  %v730_v42 = vmul.f32 %v2519_v19, %v2271_v35 }
 0x121   :  { %v475_v48 = vmin.f32 %v443_v43, 6.0  ;;  %v407_v23 = vpop.f32.mrb[28].mxu0 }
 0x122   :  { %v492_v24 = vpack.c.bf16 %v474_v45, %v472_v44  ;;  %v408_v50 = vadd.f32 %v407_v23, %v2438_v10  ;;  %v409_v32 = vpop.f32.mrb[29].mxu0 }
 0x123   :  { %v493_v51 = vpack.c.bf16 %v475_v48, %v473_v46  ;;  %v410_v52 = vadd.f32 %v409_v32, %v2441_v11  ;;  %v411_v33 = vpop.f32.mrb[30].mxu0 }
 0x124   :  { %v444_v53 = vmax.f32 %v408_v50, 0.0  ;;  %v412_v54 = vadd.f32 %v411_v33, %v2438_v10  ;;  %v413_v55 = vpop.f32.mrb[31].mxu0  ;;  %v2071_v10 = vld [vmem:[%s3053_s1 + $0x1c0] ss:$0 sps:$4 sm:$0xff]  }
 0x125   :  { %v445_v56 = vmax.f32 %v410_v52, 0.0  ;;  %v414_v57 = vadd.f32 %v413_v55, %v2441_v11  ;;  %1948 = vmatprep.mubr.msk.bf16.mxu1 %vm556_vm2, %v493_v51  ;;  %2046 = vmatprep.subr.msk.bf16.mxu0 %vm296_vm1, %v2071_v10  ;;  %v888_v11 = vsel %vm296_vm1, %v2071_v10, 0 }
 0x126   :  { %v446_v58 = vmax.f32 %v412_v54, 0.0  ;;  %662 = vmatmul.mubr.bf16.gmra.mrb[24].mxu1 %v492_v24  ;;  %v476_v61 = vmin.f32 %v444_v53, 6.0  ;;  %2019 = vmatpush3.bf16.msra.mxu0 %v888_v11 }
 0x127   :  { %v447_v59 = vmax.f32 %v414_v57, 0.0  ;;  %v477_v63 = vmin.f32 %v445_v56, 6.0  ;;  %1526 = vmatprep.subr.bf16.mxu0 %v2116_v3  ;;  %v2546_v56 = vld [vmem:[%s3054_s2 + $0x7] ss:$0 sm:$0xff] }
 0x128   :  { %v478_v62 = vmin.f32 %v446_v58, 6.0 }
 0x129   :  { %v479_v21 = vmin.f32 %v447_v59, 6.0 }
 0x12a   :  { %v494_v0 = vpack.c.bf16 %v478_v62, %v476_v61 }
 0x12b   :  { %v495_v34 = vpack.c.bf16 %v479_v21, %v477_v63 }
 0x12d   :  { %1949 = vmatprep.mubr.msk.bf16.mxu1 %vm556_vm2, %v495_v34 }
 0x12e   :  { %670 = vmatmul.mubr.bf16.gmra.mrb[28].mxu1 %v494_v0 }
 0x12f   :  { %1281 = vmatprep.mubr.bf16.mxu1 %v2116_v3 }
 0x1c9   :  { %v615_v26 = vpop.f32.mrb[0].mxu1 }
 0x1ca   :  { %v616_v31 = vadd.f32 %v615_v26, %v2505_v25  ;;  %v617_v4 = vpop.f32.mrb[1].mxu1 }
 0x1cb   :  { %v618_v49 = vpop.f32.mrb[2].mxu1 }
 0x1cc   :  { %678 = vst.msk [vmem:[#allocation2 + $0x8] sm:$0xff] %vm16_vm0, %v616_v31  ;;  %v619_v5 = vadd.f32 %v618_v49, %v2505_v25  ;;  %v620_v6 = vpop.f32.mrb[3].mxu1  ;;  %v750_v43 = vmul.f32 %v2523_v20, %v616_v31 }
 0x1ce   :  { %679 = vst.msk [vmem:[#allocation2 + $0x10] sm:$0xff] %vm16_vm0, %v619_v5  ;;  %v766_v48 = vadd.f32 %v750_v43, %v730_v42  ;;  %v751_v23 = vmul.f32 %v2523_v20, %v619_v5 }
 0x1d1   :  { %v623_v18 = vpop.f32.mrb[4].mxu1 }
 0x1d2   :  { %v624_v29 = vadd.f32 %v623_v18, %v2505_v25  ;;  %v625_v27 = vpop.f32.mrb[5].mxu1 }
 0x1d3   :  { %v626_v30 = vpop.f32.mrb[6].mxu1  ;;  %v695_v40 = vld [vmem:[#allocation2 + $0x8] sm:$0xff] }
 0x1d4   :  { %680 = vst.msk [vmem:[#allocation2 + $0x18] sm:$0xff] %vm16_vm0, %v624_v29  ;;  %v627_v36 = vadd.f32 %v626_v30, %v2505_v25  ;;  %v628_v39 = vpop.f32.mrb[7].mxu1  ;;  %v731_v44 = vmul.f32 %v2519_v19, %v695_v40  ;;  %v752_v59 = vmul.f32 %v2523_v20, %v624_v29 }
 0x1d5   :  { %v696_v41 = vld [vmem:[#allocation2 + $0x10] sm:$0xff] }
 0x1d6   :  { %681 = vst.msk [vmem:[#allocation2 + $0x20] sm:$0xff] %vm16_vm0, %v627_v36  ;;  %v786_v45 = vmul.f32 %v2528_v28, %v696_v41  ;;  %v767_v52 = vadd.f32 %v751_v23, %v731_v44  ;;  %v732_v57 = vmul.f32 %v2519_v19, %v696_v41  ;;  %v753_v10 = vmul.f32 %v2523_v20, %v627_v36 }
 0x1d8   :  { %v802_v54 = vadd.f32 %v786_v45, %v766_v48  ;;  %v768_v34 = vadd.f32 %v752_v59, %v732_v57 }
 0x1d9   :  { %v631_v46 = vpop.f32.mrb[8].mxu1 }
 0x1da   :  { %v632_v24 = vadd.f32 %v631_v46, %v2505_v25  ;;  %v633_v50 = vpop.f32.mrb[9].mxu1  ;;  %v818_v62 = vadd.f32 %v802_v54, %v2546_v56 }
 0x1db   :  { %v697_v32 = vld [vmem:[#allocation2 + $0x18] sm:$0xff]  ;;  %v634_v51 = vpop.f32.mrb[10].mxu1  ;;  %v793_v50 = vmul.f32 %v2528_v28, %v2329_v37 }
 0x1dc   :  { %682 = vst.msk [vmem:[#allocation2 + $0x28] sm:$0xff] %vm16_vm0, %v632_v24  ;;  %v635_v35 = vadd.f32 %v634_v51, %v2505_v25  ;;  %v636_v33 = vpop.f32.mrb[11].mxu1  ;;  %v787_v53 = vmul.f32 %v2528_v28, %v697_v32  ;;  %v733_v61 = vmul.f32 %v2519_v19, %v697_v32  ;;  %v754_v27 = vmul.f32 %v2523_v20, %v632_v24 }
 0x1dd   :  { %v698_v55 = vld [vmem:[#allocation2 + $0x20] sm:$0xff] }
 0x1de   :  { %683 = vst.msk [vmem:[#allocation2 + $0x30] sm:$0xff] %vm16_vm0, %v635_v35  ;;  %v803_v58 = vadd.f32 %v787_v53, %v767_v52  ;;  %v788_v21 = vmul.f32 %v2528_v28, %v698_v55  ;;  %v769_v26 = vadd.f32 %v753_v10, %v733_v61  ;;  %v734_v13 = vmul.f32 %v2519_v19, %v698_v55 }
 0x1df   :  { %v755_v40 = vmul.f32 %v2523_v20, %v635_v35 }
 0x1e0   :  { %v819_v63 = vadd.f32 %v803_v58, %v2546_v56  ;;  %v804_v5 = vadd.f32 %v788_v21, %v768_v34  ;;  %v770_v42 = vadd.f32 %v754_v27, %v734_v13 }
 0x1e1   :  { %v639_v0 = vpop.f32.mrb[12].mxu1 }
 0x1e2   :  { %v640_v11 = vadd.f32 %v639_v0, %v2505_v25  ;;  %v641_v1 = vpop.f32.mrb[13].mxu1  ;;  %v840_v2 = vpack.c.bf16 %v819_v63, %v818_v62  ;;  %v820_v30 = vadd.f32 %v804_v5, %v2546_v56  ;;  %v738_v5 = vmul.f32 %v2519_v19, %v2341_v47 }
 0x1e3   :  { %v699_v22 = vld [vmem:[#allocation2 + $0x28] sm:$0xff]  ;;  %v642_v38 = vpop.f32.mrb[14].mxu1 }
 0x1e4   :  { %684 = vst.msk [vmem:[#allocation2 + $0x38] sm:$0xff] %vm16_vm0, %v640_v11  ;;  %v643_v31 = vadd.f32 %v642_v38, %v2505_v25  ;;  %v644_v4 = vpop.f32.mrb[15].mxu1  ;;  %2020 = vmatprep.mubr.msk.bf16.mxu0 %vm16_vm0, %v840_v2  ;;  %v789_v49 = vmul.f32 %v2528_v28, %v699_v22  ;;  %v735_v29 = vmul.f32 %v2519_v19, %v699_v22 }
 0x1e5   :  { %v700_v6 = vld [vmem:[#allocation2 + $0x30] sm:$0xff]  ;;  %v756_v54 = vmul.f32 %v2523_v20, %v640_v11 }
 0x1e6   :  { %685 = vst.msk [vmem:[#allocation2 + $0x40] sm:$0xff] %vm16_vm0, %v643_v31  ;;  %v805_v18 = vadd.f32 %v789_v49, %v769_v26  ;;  %v790_v39 = vmul.f32 %v2528_v28, %v700_v6  ;;  %v771_v46 = vadd.f32 %v755_v40, %v735_v29  ;;  %v736_v48 = vmul.f32 %v2519_v19, %v700_v6 }
 0x1e7   :  { %v757_v24 = vmul.f32 %v2523_v20, %v643_v31 }
 0x1e8   :  { %v821_v36 = vadd.f32 %v805_v18, %v2546_v56  ;;  %v806_v53 = vadd.f32 %v790_v39, %v770_v42  ;;  %v772_v58 = vadd.f32 %v756_v54, %v736_v48 }
 0x1e9   :  { %v647_v41 = vpop.f32.mrb[16].mxu1 }
 0x1ea   :  { %v648_v43 = vadd.f32 %v647_v41, %v2505_v25  ;;  %v649_v44 = vpop.f32.mrb[17].mxu1  ;;  %v841_v45 = vpack.c.bf16 %v821_v36, %v820_v30  ;;  %v822_v62 = vadd.f32 %v806_v53, %v2546_v56 }
 0x1eb   :  { %v701_v23 = vld [vmem:[#allocation2 + $0x38] sm:$0xff]  ;;  %v650_v32 = vpop.f32.mrb[18].mxu1 }
 0x1ec   :  { %v737_v51 = vmul.f32 %v2519_v19, %v701_v23  ;;  %686 = vst.msk [vmem:[#allocation2 + $0x58] sm:$0xff] %vm16_vm0, %v648_v43  ;;  %v651_v52 = vadd.f32 %v650_v32, %v2505_v25  ;;  %v652_v35 = vpop.f32.mrb[19].mxu1  ;;  %2021 = vmatmul.mubr.msk.bf16.vlgmr.msra.gmra.mrb[32].mxu0 %vm16_vm0, %v841_v45  ;;  %v791_v33 = vmul.f32 %v2528_v28, %v701_v23 }
 0x1ed   :  { %v716_v55 = vld [vmem:[#allocation2 + $0x40] sm:$0xff]  ;;  %v758_v6 = vmul.f32 %v2523_v20, %v648_v43 }
 0x1ee   :  { %v773_v57 = vadd.f32 %v757_v24, %v737_v51  ;;  %687 = vst.msk [vmem:[#allocation2 + $0x60] sm:$0xff] %vm16_vm0, %v651_v52  ;;  %v807_v37 = vadd.f32 %v791_v33, %v771_v46  ;;  %v792_v59 = vmul.f32 %v2528_v28, %v716_v55  ;;  %v759_v30 = vmul.f32 %v2523_v20, %v651_v52 }
 0x1ef   :  { %v774_v27 = vadd.f32 %v758_v6, %v738_v5 }
 0x1f0   :  { %v809_v61 = vadd.f32 %v793_v50, %v773_v57  ;;  %v823_v63 = vadd.f32 %v807_v37, %v2546_v56  ;;  %v808_v0 = vadd.f32 %v792_v59, %v772_v58 }
 0x1f1   :  { %v655_v21 = vpop.f32.mrb[20].mxu1 }
 0x1f2   :  { %v825_v34 = vadd.f32 %v809_v61, %v2546_v56  ;;  %v656_v10 = vadd.f32 %v655_v21, %v2505_v25  ;;  %v657_v11 = vpop.f32.mrb[21].mxu1  ;;  %v842_v1 = vpack.c.bf16 %v823_v63, %v822_v62  ;;  %v824_v22 = vadd.f32 %v808_v0, %v2546_v56 }
 0x1f3   :  { %v658_v2 = vpop.f32.mrb[22].mxu1  ;;  %v703_v31 = vld [vmem:[#allocation2 + $0x58] sm:$0xff] }
 0x1f4   :  { %688 = vst.msk [vmem:[#allocation2 + $0x68] sm:$0xff] %vm16_vm0, %v656_v10  ;;  %v659_v38 = vadd.f32 %v658_v2, %v2505_v25  ;;  %v660_v26 = vpop.f32.mrb[23].mxu1  ;;  %2024 = vmatprep.mubr.msk.bf16.mxu0 %vm16_vm0, %v842_v1  ;;  %v843_v49 = vpack.c.bf16 %v825_v34, %v824_v22  ;;  %v739_v13 = vmul.f32 %v2519_v19, %v703_v31 }
 0x1f5   :  { %v704_v4 = vld [vmem:[#allocation2 + $0x60] sm:$0xff]  ;;  %v760_v24 = vmul.f32 %v2523_v20, %v656_v10 }
 0x1f6   :  { %689 = vst.msk [vmem:[#allocation2 + $0x70] sm:$0xff] %vm16_vm0, %v659_v38  ;;  %2025 = vmatmul.mubr.msk.bf16.gmra.mrb[36].mxu0 %vm16_vm0, %v843_v49  ;;  %v794_v18 = vmul.f32 %v2528_v28, %v704_v4  ;;  %v775_v47 = vadd.f32 %v759_v30, %v739_v13  ;;  %v740_v48 = vmul.f32 %v2519_v19, %v704_v4 }
 0x1f7   :  { %v761_v53 = vmul.f32 %v2523_v20, %v659_v38  ;;  %v801_v13 = vmul.f32 %v2528_v28, %v2403_v60 }
 0x1f8   :  { %v810_v45 = vadd.f32 %v794_v18, %v774_v27  ;;  %v776_v33 = vadd.f32 %v760_v24, %v740_v48 }
 0x1f9   :  { %v663_v29 = vpop.f32.mrb[24].mxu1 }
 0x1fa   :  { %v664_v36 = vadd.f32 %v663_v29, %v2505_v25  ;;  %v665_v39 = vpop.f32.mrb[25].mxu1  ;;  %v826_v32 = vadd.f32 %v810_v45, %v2546_v56 }
 0x1fb   :  { %v705_v40 = vld [vmem:[#allocation2 + $0x68] sm:$0xff]  ;;  %v666_v41 = vpop.f32.mrb[26].mxu1 }
 0x1fc   :  { %690 = vst.msk [vmem:[#allocation2 + $0x78] sm:$0xff] %vm16_vm0, %v664_v36  ;;  %v667_v42 = vadd.f32 %v666_v41, %v2505_v25  ;;  %v668_v43 = vpop.f32.mrb[27].mxu1  ;;  %v795_v44 = vmul.f32 %v2528_v28, %v705_v40  ;;  %v741_v50 = vmul.f32 %v2519_v19, %v705_v40  ;;  %v762_v1 = vmul.f32 %v2523_v20, %v664_v36 }
 0x1fd   :  { %v706_v46 = vld [vmem:[#allocation2 + $0x70] sm:$0xff] }
 0x1fe   :  { %691 = vst.msk [vmem:[#allocation2 + $0x80] sm:$0xff] %vm16_vm0, %v667_v42  ;;  %v811_v23 = vadd.f32 %v795_v44, %v775_v47  ;;  %v796_v52 = vmul.f32 %v2528_v28, %v706_v46  ;;  %v777_v59 = vadd.f32 %v761_v53, %v741_v50  ;;  %v742_v34 = vmul.f32 %v2519_v19, %v706_v46  ;;  %v2080_v50 = vld [vmem:[%s3053_s1 + $0x110] ss:$8 sps:$4 sm:$0xff]   ;;  %v2675_v53 = vld [vmem:[%s3054_s2 + $0x24] ss:$0 sm:$0xff] }
 0x1ff   :  { %v763_v38 = vmul.f32 %v2523_v20, %v667_v42 }
 0x200   :  { %v827_v51 = vadd.f32 %v811_v23, %v2546_v56  ;;  %v812_v21 = vadd.f32 %v796_v52, %v776_v33  ;;  %v778_v26 = vadd.f32 %v762_v1, %v742_v34  ;;  %v2083_v52 = vld [vmem:[%s3053_s1 + $0x140] ss:$8 sps:$4 sm:$0xff]  }
 0x201   :  { %v671_v35 = vpop.f32.mrb[28].mxu1  ;;  %v2085_v33 = vld [vmem:[%s3053_s1 + $0x160] ss:$8 sps:$4 sm:$0xff]  }
 0x202   :  { %v672_v54 = vadd.f32 %v671_v35, %v2505_v25  ;;  %v673_v55 = vpop.f32.mrb[29].mxu1  ;;  %v844_v57 = vpack.c.bf16 %v827_v51, %v826_v32  ;;  %v828_v2 = vadd.f32 %v812_v21, %v2546_v56  ;;  %v2081_v32 = vld [vmem:[%s3053_s1 + $0x120] ss:$8 sps:$4 sm:$0xff]   ;;  %v2082_v51 = vld [vmem:[%s3053_s1 + $0x130] ss:$8 sps:$4 sm:$0xff]  }
 0x203   :  { %v707_v37 = vld [vmem:[#allocation2 + $0x78] sm:$0xff]  ;;  %v674_v58 = vpop.f32.mrb[30].mxu1  ;;  %v2693_v34 = vld [vmem:[#allocation2] sm:$0xff] }
 0x204   :  { %692 = vst.msk [vmem:[#allocation2 + $0x88] sm:$0xff] %vm16_vm0, %v672_v54  ;;  %v675_v61 = vadd.f32 %v674_v58, %v2505_v25  ;;  %v676_v62 = vpop.f32.mrb[31].mxu1  ;;  %2028 = vmatprep.mubr.msk.bf16.mxu0 %vm16_vm0, %v844_v57  ;;  %v797_v63 = vmul.f32 %v2528_v28, %v707_v37  ;;  %v743_v11 = vmul.f32 %v2519_v19, %v707_v37  ;;  %v2084_v35 = vld [vmem:[%s3053_s1 + $0x150] ss:$8 sps:$4 sm:$0xff]  }
 0x205   :  { %v708_v0 = vld [vmem:[#allocation2 + $0x80] sm:$0xff]  ;;  %v764_v5 = vmul.f32 %v2523_v20, %v672_v54  ;;  %v987_v37 = vld [vmem:[%s3054_s2 + $0x10] sm:$0x7] }
 0x206   :  { %693 = vst.msk [vmem:[#allocation2 + $0x90] sm:$0xff] %vm16_vm0, %v675_v61  ;;  %v813_v10 = vadd.f32 %v797_v63, %v777_v59  ;;  %v798_v22 = vmul.f32 %v2528_v28, %v708_v0  ;;  %v744_v31 = vmul.f32 %v2519_v19, %v708_v0  ;;  %v779_v49 = vadd.f32 %v763_v38, %v743_v11 }
 0x207   :  { %v765_v29 = vmul.f32 %v2523_v20, %v675_v61  ;;  %v2687_v21 = vrot.slane %v987_v37, %v2186_v16  ;;  %v2690_v0 = vrot.slane %v987_v37, %v2183_v15  ;;  %v2701_v1 = vrot.slane %v987_v37, %v178_v17 }
 0x208   :  { %v829_v25 = vadd.f32 %v813_v10, %v2546_v56  ;;  %v814_v30 = vadd.f32 %v798_v22, %v778_v26  ;;  %v780_v39 = vadd.f32 %v764_v5, %v744_v31 }
 0x209   :  { %v1071_v10 = vmul.f32 %v2690_v0, %v2693_v34 }
 0x20a   :  { %v845_v4 = vpack.c.bf16 %v829_v25, %v828_v2  ;;  %v830_v43 = vadd.f32 %v814_v30, %v2546_v56 }
 0x20b   :  { %v709_v6 = vld [vmem:[#allocation2 + $0x88] sm:$0xff] }
 0x20c   :  { %v745_v18 = vmul.f32 %v2519_v19, %v709_v6  ;;  %2029 = vmatmul.mubr.msk.bf16.gmra.mrb[40].mxu0 %vm16_vm0, %v845_v4  ;;  %v799_v27 = vmul.f32 %v2528_v28, %v709_v6 }
 0x20d   :  { %v724_v36 = vld [vmem:[#allocation2 + $0x90] sm:$0xff] }
 0x20e   :  { %v781_v40 = vadd.f32 %v765_v29, %v745_v18  ;;  %v815_v41 = vadd.f32 %v799_v27, %v779_v49  ;;  %v800_v47 = vmul.f32 %v2528_v28, %v724_v36  ;;  %v993_v28 = vld [vmem:[%s3053_s1 + $0xf0] sm:$0xff] }
 0x20f   :  { %v1967_v48 = vcombine.high %v993_v28, %v993_v28  ;;  %v1966_v23 = vcombine.low %v993_v28, %v993_v28  ;;  %v2714_v36 = vld [vmem:[%s3054_s2 + $0x13] ss:$0 sm:$0xff] }
 0x210   :  { %v817_v42 = vadd.f32 %v801_v13, %v781_v40  ;;  %v831_v60 = vadd.f32 %v815_v41, %v2546_v56  ;;  %v816_v44 = vadd.f32 %v800_v47, %v780_v39 }
 0x211   :  { %1968 = vmatprep.subr.msk.bf16.mxu1 %vm296_vm1, %v1967_v48  ;;  %v1244_v24 = vsel %vm296_vm1, %v1966_v23, 0 }
 0x212   :  { %v833_v19 = vadd.f32 %v817_v42, %v2546_v56  ;;  %v846_v20 = vpack.c.bf16 %v831_v60, %v830_v43  ;;  %v832_v45 = vadd.f32 %v816_v44, %v2546_v56  ;;  %1254 = vmatpush1.bf16.msra.mxu1 %v1244_v24  ;;  %v2079_v56 = vld [vmem:[%s3053_s1 + $0x100] ss:$8 sps:$4 sm:$0xff]  }
 0x213   :  { %2036 = vmatprep.subr.bf16.mxu1 %v2117_v7  ;;  %1527 = vmatpush1.bf16.msra.mxu0 %v2079_v56 }
 0x214   :  { %2032 = vmatprep.mubr.msk.bf16.mxu0 %vm16_vm0, %v846_v20  ;;  %v847_v46 = vpack.c.bf16 %v833_v19, %v832_v45  ;;  %1528 = vmatprep.subr.bf16.mxu0 %v2116_v3  ;;  %v2725_v45 = vld [vmem:[#allocation2 + $0x48] sm:$0xff] }
 0x216   :  { %2033 = vmatmul.mubr.msk.bf16.gmra.mrb[44].mxu0 %vm16_vm0, %v847_v46 }
 0x217   :  { %1529 = vmatpush1.bf16.msra.mxu0 %v2080_v50 }
 0x218   :  { %1530 = vmatprep.subr.bf16.mxu0 %v2116_v3 }
 0x21b   :  { %1531 = vmatpush1.bf16.msra.mxu0 %v2081_v32 }
 0x21c   :  { %1532 = vmatprep.subr.bf16.mxu0 %v2116_v3 }
 0x21f   :  { %1533 = vmatpush1.bf16.msra.mxu0 %v2082_v51  ;;  %v1134_v51 = vmul.f32 %v2701_v1, %v2725_v45 }
 0x220   :  { %1534 = vmatprep.subr.bf16.mxu0 %v2116_v3 }
 0x223   :  { %1535 = vmatpush1.bf16.msra.mxu0 %v2083_v52 }
 0x224   :  { %1536 = vmatprep.subr.bf16.mxu0 %v2116_v3 }
 0x227   :  { %1537 = vmatpush1.bf16.msra.mxu0 %v2084_v35 }
 0x228   :  { %1538 = vmatprep.subr.bf16.mxu0 %v2116_v3 }
 0x22b   :  { %1539 = vmatpush1.bf16.msra.mxu0 %v2085_v33 }
 0x22c   :  { %1540 = vmatprep.subr.bf16.mxu0 %v2116_v3 }
 0x2bf   :  { %v2022_v54 = vpop.f32.mrb[32].mxu0 }
 0x2c0   :  { %v933_v55 = vadd.f32 %v2022_v54, %v2675_v53  ;;  %v924_v57 = vpop.f32.mrb[33].mxu0 }
 0x2c1   :  { %v925_v58 = vadd.f32 %v924_v57, %v2675_v53  ;;  %v2023_v59 = vpop.f32.mrb[34].mxu0 }
 0x2c2   :  { %1021 = vst.msk [vmem:[#allocation2 + $0x18] sm:$0xff] %vm16_vm0, %v933_v55  ;;  %v936_v61 = vadd.f32 %v2023_v59, %v2675_v53  ;;  %v927_v62 = vpop.f32.mrb[35].mxu0  ;;  %v1093_v41 = vmul.f32 %v2687_v21, %v933_v55 }
 0x2c3   :  { %1019 = vst.msk [vmem:[#allocation2 + $0x8] sm:$0xff] %vm16_vm0, %v925_v58  ;;  %v928_v63 = vadd.f32 %v927_v62, %v2675_v53  ;;  %v1091_v11 = vmul.f32 %v2687_v21, %v925_v58 }
 0x2c4   :  { %1022 = vst.msk [vmem:[#allocation2 + $0x20] sm:$0xff] %vm16_vm0, %v936_v61  ;;  %v1094_v24 = vmul.f32 %v2687_v21, %v936_v61 }
 0x2c5   :  { %1020 = vst.msk [vmem:[#allocation2 + $0x10] sm:$0xff] %vm16_vm0, %v928_v63  ;;  %v1092_v26 = vmul.f32 %v2687_v21, %v928_v63  ;;  %v1107_v49 = vadd.f32 %v1091_v11, %v1071_v10 }
 0x2c9   :  { %v1038_v2 = vld [vmem:[#allocation2 + $0x18] sm:$0xff]  ;;  %v2026_v22 = vpop.f32.mrb[36].mxu0 }
 0x2ca   :  { %v1036_v25 = vld [vmem:[#allocation2 + $0x8] sm:$0xff]  ;;  %v949_v31 = vadd.f32 %v2026_v22, %v2675_v53  ;;  %v940_v4 = vpop.f32.mrb[37].mxu0  ;;  %v1128_v17 = vmul.f32 %v2701_v1, %v1038_v2  ;;  %v1074_v20 = vmul.f32 %v2690_v0, %v1038_v2 }
 0x2cb   :  { %v1072_v38 = vmul.f32 %v2690_v0, %v1036_v25  ;;  %v941_v6 = vadd.f32 %v940_v4, %v2675_v53  ;;  %v2027_v13 = vpop.f32.mrb[38].mxu0  ;;  %v1039_v43 = vld [vmem:[#allocation2 + $0x20] sm:$0xff] }
 0x2cc   :  { %v1051_v5 = vld [vmem:[#allocation2 + $0x10] sm:$0xff]  ;;  %1025 = vst.msk [vmem:[#allocation2 + $0x38] sm:$0xff] %vm16_vm0, %v949_v31  ;;  %v952_v27 = vadd.f32 %v2027_v13, %v2675_v53  ;;  %v943_v30 = vpop.f32.mrb[39].mxu0  ;;  %v1075_v28 = vmul.f32 %v2690_v0, %v1039_v43  ;;  %v1129_v23 = vmul.f32 %v2701_v1, %v1039_v43  ;;  %v1110_v33 = vadd.f32 %v1094_v24, %v1074_v20 }
 0x2cd   :  { %v1108_v18 = vadd.f32 %v1092_v26, %v1072_v38  ;;  %v1127_v29 = vmul.f32 %v2701_v1, %v1051_v5  ;;  %1023 = vst.msk [vmem:[#allocation2 + $0x28] sm:$0xff] %vm16_vm0, %v941_v6  ;;  %v944_v39 = vadd.f32 %v943_v30, %v2675_v53  ;;  %v1073_v40 = vmul.f32 %v2690_v0, %v1051_v5  ;;  %v2760_v20 = vld [vmem:[#allocation2 + $0x50] sm:$0xff] }
 0x2ce   :  { %1026 = vst.msk [vmem:[#allocation2 + $0x40] sm:$0xff] %vm16_vm0, %v952_v27  ;;  %v1095_v48 = vmul.f32 %v2687_v21, %v941_v6  ;;  %v1098_v32 = vmul.f32 %v2687_v21, %v952_v27  ;;  %v1097_v58 = vmul.f32 %v2687_v21, %v949_v31 }
 0x2cf   :  { %v1143_v47 = vadd.f32 %v1127_v29, %v1107_v49  ;;  %v1144_v42 = vadd.f32 %v1128_v17, %v1108_v18  ;;  %1024 = vst.msk [vmem:[#allocation2 + $0x30] sm:$0xff] %vm16_vm0, %v944_v39  ;;  %v1109_v19 = vadd.f32 %v1093_v41, %v1073_v40  ;;  %v1096_v55 = vmul.f32 %v2687_v21, %v944_v39 }
 0x2d0   :  { %v1111_v59 = vadd.f32 %v1095_v48, %v1075_v28 }
 0x2d1   :  { %v1159_v60 = vadd.f32 %v1143_v47, %v2714_v36  ;;  %v1160_v44 = vadd.f32 %v1144_v42, %v2714_v36  ;;  %v1145_v35 = vadd.f32 %v1129_v23, %v1109_v19 }
 0x2d3   :  { %v1175_v46 = vpack.c.bf16 %v1160_v44, %v1159_v60  ;;  %v1042_v56 = vld [vmem:[#allocation2 + $0x38] sm:$0xff]  ;;  %v1161_v38 = vadd.f32 %v1145_v35, %v2714_v36 }
 0x2d4   :  { %v1078_v50 = vmul.f32 %v2690_v0, %v1042_v56  ;;  %v1040_v52 = vld [vmem:[#allocation2 + $0x28] sm:$0xff]  ;;  %v1132_v62 = vmul.f32 %v2701_v1, %v1042_v56 }
 0x2d5   :  { %1969 = vmatmul.mubr.msk.bf16.vlgmr.msra.gmra.mrb[32].mxu1 %vm16_vm0, %v1175_v46  ;;  %v1076_v54 = vmul.f32 %v2690_v0, %v1040_v52  ;;  %v1130_v57 = vmul.f32 %v2701_v1, %v1040_v52  ;;  %v1057_v37 = vld [vmem:[#allocation2 + $0x40] sm:$0xff]  ;;  %v1079_v46 = vmul.f32 %v2690_v0, %v2760_v20 }
 0x2d6   :  { %1291 = vmatprep.mubr.bf16.mxu1 %v2116_v3  ;;  %v1114_v61 = vadd.f32 %v1098_v32, %v1078_v50  ;;  %v1055_v63 = vld [vmem:[#allocation2 + $0x30] sm:$0xff]  ;;  %v1133_v26 = vmul.f32 %v2701_v1, %v1057_v37 }
 0x2d7   :  { %v1112_v10 = vadd.f32 %v1096_v55, %v1076_v54  ;;  %v1146_v11 = vadd.f32 %v1130_v57, %v1110_v33  ;;  %v1131_v2 = vmul.f32 %v2701_v1, %v1055_v63  ;;  %v1077_v25 = vmul.f32 %v2690_v0, %v1055_v63 }
 0x2d8   :  { %v1150_v22 = vadd.f32 %v1134_v51, %v1114_v61 }
 0x2d9   :  { %v1148_v4 = vadd.f32 %v1132_v62, %v1112_v10  ;;  %v1162_v49 = vadd.f32 %v1146_v11, %v2714_v36  ;;  %v1147_v31 = vadd.f32 %v1131_v2, %v1111_v59  ;;  %v1113_v5 = vadd.f32 %v1097_v58, %v1077_v25 }
 0x2da   :  { %v1166_v17 = vadd.f32 %v1150_v22, %v2714_v36 }
 0x2db   :  { %v1164_v6 = vadd.f32 %v1148_v4, %v2714_v36  ;;  %v1176_v13 = vpack.c.bf16 %v1162_v49, %v1161_v38  ;;  %v1163_v18 = vadd.f32 %v1147_v31, %v2714_v36  ;;  %v1149_v29 = vadd.f32 %v1133_v26, %v1113_v5  ;;  %v2786_v38 = vld [vmem:[#allocation2 + $0x98] sm:$0xff] }
 0x2dd   :  { %1970 = vmatmul.mubr.msk.bf16.gmra.mrb[36].mxu1 %vm16_vm0, %v1176_v13  ;;  %v1177_v27 = vpack.c.bf16 %v1164_v6, %v1163_v18  ;;  %v1165_v30 = vadd.f32 %v1149_v29, %v2714_v36 }
 0x2de   :  { %1301 = vmatprep.mubr.bf16.mxu1 %v2116_v3 }
 0x2df   :  { %v2030_v39 = vpop.f32.mrb[40].mxu0  ;;  %v1178_v47 = vpack.c.bf16 %v1166_v17, %v1165_v30  ;;  %v1142_v17 = vmul.f32 %v2701_v1, %v2786_v38 }
 0x2e0   :  { %v965_v40 = vadd.f32 %v2030_v39, %v2675_v53  ;;  %v956_v41 = vpop.f32.mrb[41].mxu0 }
 0x2e1   :  { %v957_v42 = vadd.f32 %v956_v41, %v2675_v53  ;;  %v2031_v43 = vpop.f32.mrb[42].mxu0 }
 0x2e2   :  { %1029 = vst.msk [vmem:[#allocation2 + $0x68] sm:$0xff] %vm16_vm0, %v965_v40  ;;  %v968_v60 = vadd.f32 %v2031_v43, %v2675_v53  ;;  %v959_v44 = vpop.f32.mrb[43].mxu0  ;;  %v1101_v62 = vmul.f32 %v2687_v21, %v965_v40 }
 0x2e3   :  { %1027 = vst.msk [vmem:[#allocation2 + $0x58] sm:$0xff] %vm16_vm0, %v957_v42  ;;  %v960_v19 = vadd.f32 %v959_v44, %v2675_v53  ;;  %v1099_v28 = vmul.f32 %v2687_v21, %v957_v42 }
 0x2e4   :  { %1030 = vst.msk [vmem:[#allocation2 + $0x70] sm:$0xff] %vm16_vm0, %v968_v60  ;;  %v1102_v5 = vmul.f32 %v2687_v21, %v968_v60 }
 0x2e5   :  { %1028 = vst.msk [vmem:[#allocation2 + $0x60] sm:$0xff] %vm16_vm0, %v960_v19  ;;  %1971 = vmatmul.mubr.msk.bf16.gmra.mrb[40].mxu1 %vm16_vm0, %v1177_v27  ;;  %v1100_v51 = vmul.f32 %v2687_v21, %v960_v19  ;;  %v1115_v33 = vadd.f32 %v1099_v28, %v1079_v46 }
 0x2e6   :  { %1311 = vmatprep.mubr.bf16.mxu1 %v2116_v3 }
 0x2e9   :  { %v2034_v48 = vpop.f32.mrb[44].mxu0  ;;  %v1046_v23 = vld [vmem:[#allocation2 + $0x68] sm:$0xff] }
 0x2ea   :  { %v1044_v24 = vld [vmem:[#allocation2 + $0x58] sm:$0xff]  ;;  %v981_v56 = vadd.f32 %v2034_v48, %v2675_v53  ;;  %v972_v50 = vpop.f32.mrb[45].mxu0  ;;  %v1136_v58 = vmul.f32 %v2701_v1, %v1046_v23 }
 0x2eb   :  { %v1080_v32 = vmul.f32 %v2690_v0, %v1044_v24  ;;  %v973_v52 = vadd.f32 %v972_v50, %v2675_v53  ;;  %v2035_v35 = vpop.f32.mrb[46].mxu0  ;;  %v1047_v11 = vld [vmem:[#allocation2 + $0x70] sm:$0xff] }
 0x2ec   :  { %1033 = vst.msk [vmem:[#allocation2 + $0x88] sm:$0xff] %vm16_vm0, %v981_v56  ;;  %v984_v54 = vadd.f32 %v2035_v35, %v2675_v53  ;;  %v975_v55 = vpop.f32.mrb[47].mxu0  ;;  %v1059_v57 = vld [vmem:[#allocation2 + $0x60] sm:$0xff]  ;;  %v1083_v4 = vmul.f32 %v2690_v0, %v1047_v11  ;;  %v1137_v31 = vmul.f32 %v2701_v1, %v1047_v11  ;;  %v1105_v43 = vmul.f32 %v2687_v21, %v981_v56 }
 0x2ed   :  { %v1116_v37 = vadd.f32 %v1100_v51, %v1080_v32  ;;  %1031 = vst.msk [vmem:[#allocation2 + $0x78] sm:$0xff] %vm16_vm0, %v973_v52  ;;  %v976_v59 = vadd.f32 %v975_v55, %v2675_v53  ;;  %v1135_v61 = vmul.f32 %v2701_v1, %v1059_v57  ;;  %1972 = vmatmul.mubr.msk.bf16.gmra.mrb[44].mxu1 %vm16_vm0, %v1178_v47 }
 0x2ee   :  { %1034 = vst.msk [vmem:[#allocation2 + $0x90] sm:$0xff] %vm16_vm0, %v984_v54  ;;  %v1081_v63 = vmul.f32 %v2690_v0, %v1059_v57  ;;  %1321 = vmatprep.mubr.bf16.mxu1 %v2116_v3  ;;  %v1082_v53 = vmul.f32 %v2690_v0, %v1046_v23  ;;  %v1103_v49 = vmul.f32 %v2687_v21, %v973_v52 }
 0x2ef   :  { %v1152_v10 = vadd.f32 %v1136_v58, %v1116_v37  ;;  %1032 = vst.msk [vmem:[#allocation2 + $0x80] sm:$0xff] %vm16_vm0, %v976_v59  ;;  %v1151_v2 = vadd.f32 %v1135_v61, %v1115_v33  ;;  %v1106_v29 = vmul.f32 %v2687_v21, %v984_v54  ;;  %v1104_v41 = vmul.f32 %v2687_v21, %v976_v59  ;;  %v2086_v59 = vld [vmem:[%s3053_s1 + $0x170] ss:$8 sps:$4 sm:$0xff]  }
 0x2f0   :  { %v1117_v25 = vadd.f32 %v1101_v62, %v1081_v63  ;;  %v1118_v39 = vadd.f32 %v1102_v5, %v1082_v53  ;;  %v1119_v60 = vadd.f32 %v1103_v49, %v1083_v4  ;;  %1541 = vmatpush1.bf16.msra.mxu0 %v2086_v59  ;;  %v2088_v61 = vld [vmem:[%s3053_s1 + $0x190] ss:$8 sps:$4 sm:$0xff]   ;;  %v1961_v62 = vld [vmem:[%s3054_s2 + $0x21] ss:$8 sm:$0x3] }
 0x2f1   :  { %v1168_v22 = vadd.f32 %v1152_v10, %v2714_v36  ;;  %v1167_v26 = vadd.f32 %v1151_v2, %v2714_v36  ;;  %1542 = vmatprep.subr.bf16.mxu0 %v2116_v3  ;;  %v2833_v63 = vrot.slane %v1961_v62, %v2183_v15  ;;  %v2836_v10 = vrot.slane %v1961_v62, %v2186_v16 }
 0x2f2   :  { %v1153_v30 = vadd.f32 %v1137_v31, %v1117_v25 }
 0x2f3   :  { %v1050_v6 = vld [vmem:[#allocation2 + $0x88] sm:$0xff]  ;;  %v1179_v13 = vpack.c.bf16 %v1168_v22, %v1167_v26 }
 0x2f4   :  { %v1086_v18 = vmul.f32 %v2690_v0, %v1050_v6  ;;  %v1048_v27 = vld [vmem:[#allocation2 + $0x78] sm:$0xff]  ;;  %v1140_v19 = vmul.f32 %v2701_v1, %v1050_v6  ;;  %v1169_v32 = vadd.f32 %v1153_v30, %v2714_v36 }
 0x2f5   :  { %v1084_v40 = vmul.f32 %v2690_v0, %v1048_v27  ;;  %v1138_v47 = vmul.f32 %v2701_v1, %v1048_v27  ;;  %v1065_v42 = vld [vmem:[#allocation2 + $0x90] sm:$0xff]  ;;  %1973 = vmatmul.mubr.msk.bf16.gmra.mrb[48].mxu1 %vm16_vm0, %v1179_v13 }
 0x2f6   :  { %v1122_v44 = vadd.f32 %v1106_v29, %v1086_v18  ;;  %v1063_v46 = vld [vmem:[#allocation2 + $0x80] sm:$0xff]  ;;  %1331 = vmatprep.mubr.bf16.mxu1 %v2116_v3  ;;  %v1141_v21 = vmul.f32 %v2701_v1, %v1065_v42 }
 0x2f7   :  { %v1120_v28 = vadd.f32 %v1104_v41, %v1084_v40  ;;  %v1154_v48 = vadd.f32 %v1138_v47, %v1118_v39  ;;  %v1139_v23 = vmul.f32 %v2701_v1, %v1063_v46  ;;  %v1085_v24 = vmul.f32 %v2690_v0, %v1063_v46 }
 0x2f8   :  { %v1158_v50 = vadd.f32 %v1142_v17, %v1122_v44 }
 0x2f9   :  { %v1156_v56 = vadd.f32 %v1140_v19, %v1120_v28  ;;  %v1170_v51 = vadd.f32 %v1154_v48, %v2714_v36  ;;  %v1155_v52 = vadd.f32 %v1139_v23, %v1119_v60  ;;  %v1121_v35 = vadd.f32 %v1105_v43, %v1085_v24 }
 0x2fa   :  { %v1174_v37 = vadd.f32 %v1158_v50, %v2714_v36 }
 0x2fb   :  { %v1172_v33 = vadd.f32 %v1156_v56, %v2714_v36  ;;  %v1180_v54 = vpack.c.bf16 %v1170_v51, %v1169_v32  ;;  %v1171_v55 = vadd.f32 %v1155_v52, %v2714_v36  ;;  %v1157_v57 = vadd.f32 %v1141_v21, %v1121_v35 }
 0x2fd   :  { %v1181_v58 = vpack.c.bf16 %v1172_v33, %v1171_v55  ;;  %v1173_v0 = vadd.f32 %v1157_v57, %v2714_v36  ;;  %1974 = vmatmul.mubr.msk.bf16.gmra.mrb[52].mxu1 %vm16_vm0, %v1180_v54  ;;  %v2087_v36 = vld [vmem:[%s3053_s1 + $0x180] ss:$8 sps:$4 sm:$0xff]  }
 0x2fe   :  { %1341 = vmatprep.mubr.bf16.mxu1 %v2116_v3  ;;  %1543 = vmatpush1.bf16.msra.mxu0 %v2087_v36 }
 0x2ff   :  { %v1182_v1 = vpack.c.bf16 %v1174_v37, %v1173_v0  ;;  %1544 = vmatprep.subr.bf16.mxu0 %v2116_v3 }
 0x302   :  { %1545 = vmatpush1.bf16.msra.mxu0 %v2088_v61 }
 0x305   :  { %1975 = vmatmul.mubr.msk.bf16.gmra.mrb[56].mxu1 %vm16_vm0, %v1181_v58 }
 0x306   :  { %1351 = vmatprep.mubr.bf16.mxu1 %v2116_v3 }
 0x30d   :  { %1976 = vmatmul.mubr.msk.bf16.gmra.mrb[60].mxu1 %vm16_vm0, %v1182_v1 }
 0x30e   :  { %2042 = vmatprep.mubr.msk.bf16.mxu1 %vm2118_vm3, %v2117_v7 }
 0x3a8   :  { %v1283_v11 = vpop.f32.mrb[32].mxu1 }
 0x3a9   :  { %v1284_v2 = vadd.f32 %v1283_v11, %v2833_v63  ;;  %v1285_v25 = vpop.f32.mrb[33].mxu1 }
 0x3aa   :  { %v1286_v3 = vadd.f32 %v1285_v25, %v2836_v10  ;;  %v1287_v53 = vpop.f32.mrb[34].mxu1 }
 0x3ab   :  { %v1362_v22 = vmax.f32 %v1284_v2, 0.0  ;;  %v1288_v26 = vadd.f32 %v1287_v53, %v2833_v63  ;;  %v1289_v4 = vpop.f32.mrb[35].mxu1 }
 0x3ac   :  { %v1363_v49 = vmax.f32 %v1286_v3, 0.0  ;;  %v1290_v31 = vadd.f32 %v1289_v4, %v2836_v10 }
 0x3ad   :  { %v1364_v5 = vmax.f32 %v1288_v26, 0.0  ;;  %v1394_v6 = vmin.f32 %v1362_v22, 6.0 }
 0x3ae   :  { %v1365_v15 = vmax.f32 %v1290_v31, 0.0  ;;  %v1395_v16 = vmin.f32 %v1363_v49, 6.0 }
 0x3af   :  { %v1396_v13 = vmin.f32 %v1364_v5, 6.0 }
 0x3b0   :  { %v1397_v18 = vmin.f32 %v1365_v15, 6.0  ;;  %v1293_v17 = vpop.f32.mrb[36].mxu1 }
 0x3b1   :  { %v1426_v29 = vpack.c.bf16 %v1396_v13, %v1394_v6  ;;  %v1294_v30 = vadd.f32 %v1293_v17, %v2833_v63  ;;  %v1295_v39 = vpop.f32.mrb[37].mxu1 }
 0x3b2   :  { %v1427_v27 = vpack.c.bf16 %v1397_v18, %v1395_v16  ;;  %v1296_v40 = vadd.f32 %v1295_v39, %v2836_v10  ;;  %v1297_v41 = vpop.f32.mrb[38].mxu1 }
 0x3b3   :  { %v1366_v47 = vmax.f32 %v1294_v30, 0.0  ;;  %v1298_v42 = vadd.f32 %v1297_v41, %v2833_v63  ;;  %v1299_v43 = vpop.f32.mrb[39].mxu1 }
 0x3b4   :  { %1987 = vmatprep.mubr.msk.bf16.mxu0 %vm556_vm2, %v1427_v27  ;;  %v1367_v60 = vmax.f32 %v1296_v40, 0.0  ;;  %v1300_v44 = vadd.f32 %v1299_v43, %v2836_v10 }
 0x3b5   :  { %1559 = vmatmul.mubr.bf16.vlgmr.msra.gmra.mrb[48].mxu0 %v1426_v29  ;;  %v1368_v19 = vmax.f32 %v1298_v42, 0.0  ;;  %v1398_v28 = vmin.f32 %v1366_v47, 6.0 }
 0x3b6   :  { %v1369_v46 = vmax.f32 %v1300_v44, 0.0  ;;  %v1399_v23 = vmin.f32 %v1367_v60, 6.0 }
 0x3b7   :  { %v1400_v48 = vmin.f32 %v1368_v19, 6.0 }
 0x3b8   :  { %v1401_v24 = vmin.f32 %v1369_v46, 6.0  ;;  %v1303_v50 = vpop.f32.mrb[40].mxu1 }
 0x3b9   :  { %v1428_v32 = vpack.c.bf16 %v1400_v48, %v1398_v28  ;;  %v1304_v21 = vadd.f32 %v1303_v50, %v2833_v63  ;;  %v1305_v56 = vpop.f32.mrb[41].mxu1 }
 0x3ba   :  { %v1429_v51 = vpack.c.bf16 %v1401_v24, %v1399_v23  ;;  %v1306_v52 = vadd.f32 %v1305_v56, %v2836_v10  ;;  %v1307_v35 = vpop.f32.mrb[42].mxu1 }
 0x3bb   :  { %v1370_v33 = vmax.f32 %v1304_v21, 0.0  ;;  %v1308_v54 = vadd.f32 %v1307_v35, %v2833_v63  ;;  %v1309_v55 = vpop.f32.mrb[43].mxu1 }
 0x3bc   :  { %v1371_v57 = vmax.f32 %v1306_v52, 0.0  ;;  %v1310_v37 = vadd.f32 %v1309_v55, %v2836_v10  ;;  %1988 = vmatprep.mubr.msk.bf16.mxu0 %vm556_vm2, %v1429_v51 }
 0x3bd   :  { %v1372_v58 = vmax.f32 %v1308_v54, 0.0  ;;  %1567 = vmatmul.mubr.bf16.gmra.mrb[52].mxu0 %v1428_v32  ;;  %v1402_v1 = vmin.f32 %v1370_v33, 6.0 }
 0x3be   :  { %v1373_v0 = vmax.f32 %v1310_v37, 0.0  ;;  %v1403_v36 = vmin.f32 %v1371_v57, 6.0 }
 0x3bf   :  { %v1404_v59 = vmin.f32 %v1372_v58, 6.0 }
 0x3c0   :  { %v1405_v61 = vmin.f32 %v1373_v0, 6.0  ;;  %v1313_v62 = vpop.f32.mrb[44].mxu1 }
 0x3c1   :  { %v1430_v11 = vpack.c.bf16 %v1404_v59, %v1402_v1  ;;  %v1314_v2 = vadd.f32 %v1313_v62, %v2833_v63  ;;  %v1315_v25 = vpop.f32.mrb[45].mxu1 }
 0x3c2   :  { %v1431_v3 = vpack.c.bf16 %v1405_v61, %v1403_v36  ;;  %v1316_v53 = vadd.f32 %v1315_v25, %v2836_v10  ;;  %v1317_v22 = vpop.f32.mrb[46].mxu1 }
 0x3c3   :  { %v1374_v26 = vmax.f32 %v1314_v2, 0.0  ;;  %v1318_v4 = vadd.f32 %v1317_v22, %v2833_v63  ;;  %v1319_v49 = vpop.f32.mrb[47].mxu1 }
 0x3c4   :  { %v1375_v31 = vmax.f32 %v1316_v53, 0.0  ;;  %v1320_v5 = vadd.f32 %v1319_v49, %v2836_v10  ;;  %1989 = vmatprep.mubr.msk.bf16.mxu0 %vm556_vm2, %v1431_v3 }
 0x3c5   :  { %v1376_v15 = vmax.f32 %v1318_v4, 0.0  ;;  %1575 = vmatmul.mubr.bf16.gmra.mrb[56].mxu0 %v1430_v11  ;;  %v1406_v13 = vmin.f32 %v1374_v26, 6.0 }
 0x3c6   :  { %v1377_v6 = vmax.f32 %v1320_v5, 0.0  ;;  %v1407_v18 = vmin.f32 %v1375_v31, 6.0 }
 0x3c7   :  { %v1408_v16 = vmin.f32 %v1376_v15, 6.0 }
 0x3c8   :  { %v1409_v29 = vmin.f32 %v1377_v6, 6.0  ;;  %v1323_v17 = vpop.f32.mrb[48].mxu1 }
 0x3c9   :  { %v1432_v27 = vpack.c.bf16 %v1408_v16, %v1406_v13  ;;  %v1324_v30 = vadd.f32 %v1323_v17, %v2833_v63  ;;  %v1325_v39 = vpop.f32.mrb[49].mxu1 }
 0x3ca   :  { %v1433_v40 = vpack.c.bf16 %v1409_v29, %v1407_v18  ;;  %v1326_v41 = vadd.f32 %v1325_v39, %v2836_v10  ;;  %v1327_v47 = vpop.f32.mrb[50].mxu1 }
 0x3cb   :  { %v1378_v42 = vmax.f32 %v1324_v30, 0.0  ;;  %v1328_v43 = vadd.f32 %v1327_v47, %v2833_v63  ;;  %v1329_v60 = vpop.f32.mrb[51].mxu1 }
 0x3cc   :  { %v1379_v44 = vmax.f32 %v1326_v41, 0.0  ;;  %v1330_v19 = vadd.f32 %v1329_v60, %v2836_v10  ;;  %1990 = vmatprep.mubr.msk.bf16.mxu0 %vm556_vm2, %v1433_v40 }
 0x3cd   :  { %v1380_v46 = vmax.f32 %v1328_v43, 0.0  ;;  %1583 = vmatmul.mubr.bf16.gmra.mrb[60].mxu0 %v1432_v27  ;;  %v1410_v48 = vmin.f32 %v1378_v42, 6.0 }
 0x3ce   :  { %v1381_v28 = vmax.f32 %v1330_v19, 0.0  ;;  %v1411_v24 = vmin.f32 %v1379_v44, 6.0 }
 0x3cf   :  { %v1412_v23 = vmin.f32 %v1380_v46, 6.0 }
 0x3d0   :  { %v1413_v50 = vmin.f32 %v1381_v28, 6.0  ;;  %v1333_v32 = vpop.f32.mrb[52].mxu1 }
 0x3d1   :  { %v1434_v21 = vpack.c.bf16 %v1412_v23, %v1410_v48  ;;  %v1334_v56 = vadd.f32 %v1333_v32, %v2833_v63  ;;  %v1335_v51 = vpop.f32.mrb[53].mxu1 }
 0x3d2   :  { %v1435_v52 = vpack.c.bf16 %v1413_v50, %v1411_v24  ;;  %v1336_v35 = vadd.f32 %v1335_v51, %v2836_v10  ;;  %v1337_v33 = vpop.f32.mrb[54].mxu1  ;;  %v2091_v51 = vld [vmem:[%s3053_s1 + $0x1f0] ss:$0 sps:$4 sm:$0xff]  }
 0x3d3   :  { %v1382_v54 = vmax.f32 %v1334_v56, 0.0  ;;  %v1338_v55 = vadd.f32 %v1337_v33, %v2833_v63  ;;  %v1339_v57 = vpop.f32.mrb[55].mxu1 }
 0x3d4   :  { %v1383_v37 = vmax.f32 %v1336_v35, 0.0  ;;  %v1340_v58 = vadd.f32 %v1339_v57, %v2836_v10  ;;  %1991 = vmatprep.mubr.msk.bf16.mxu0 %vm556_vm2, %v1435_v52  ;;  %v1858_v52 = vsel %vm296_vm1, %v2091_v51, 0  ;;  %v2894_v35 = vld [vmem:[%s3054_s2 + $0x23] ss:$0 sm:$0xff] }
 0x3d5   :  { %v1384_v0 = vmax.f32 %v1338_v55, 0.0  ;;  %1591 = vmatmul.mubr.bf16.gmra.mrb[64].mxu0 %v1434_v21  ;;  %v1414_v59 = vmin.f32 %v1382_v54, 6.0 }
 0x3d6   :  { %v1385_v1 = vmax.f32 %v1340_v58, 0.0  ;;  %v1415_v61 = vmin.f32 %v1383_v37, 6.0 }
 0x3d7   :  { %v1416_v36 = vmin.f32 %v1384_v0, 6.0 }
 0x3d8   :  { %v1417_v62 = vmin.f32 %v1385_v1, 6.0  ;;  %v1343_v11 = vpop.f32.mrb[56].mxu1 }
 0x3d9   :  { %v1436_v2 = vpack.c.bf16 %v1416_v36, %v1414_v59  ;;  %v1344_v25 = vadd.f32 %v1343_v11, %v2833_v63  ;;  %v1345_v3 = vpop.f32.mrb[57].mxu1 }
 0x3da   :  { %v1437_v53 = vpack.c.bf16 %v1417_v62, %v1415_v61  ;;  %v1346_v22 = vadd.f32 %v1345_v3, %v2836_v10  ;;  %v1347_v26 = vpop.f32.mrb[58].mxu1 }
 0x3db   :  { %v1386_v4 = vmax.f32 %v1344_v25, 0.0  ;;  %v1348_v49 = vadd.f32 %v1347_v26, %v2833_v63  ;;  %v1349_v31 = vpop.f32.mrb[59].mxu1 }
 0x3dc   :  { %v1387_v5 = vmax.f32 %v1346_v22, 0.0  ;;  %v1350_v15 = vadd.f32 %v1349_v31, %v2836_v10  ;;  %1992 = vmatprep.mubr.msk.bf16.mxu0 %vm556_vm2, %v1437_v53 }
 0x3dd   :  { %v1388_v6 = vmax.f32 %v1348_v49, 0.0  ;;  %1599 = vmatmul.mubr.bf16.gmra.mrb[68].mxu0 %v1436_v2  ;;  %v1418_v16 = vmin.f32 %v1386_v4, 6.0 }
 0x3de   :  { %v1389_v13 = vmax.f32 %v1350_v15, 0.0  ;;  %v1419_v29 = vmin.f32 %v1387_v5, 6.0 }
 0x3df   :  { %v1420_v18 = vmin.f32 %v1388_v6, 6.0 }
 0x3e0   :  { %v1421_v17 = vmin.f32 %v1389_v13, 6.0  ;;  %v1353_v27 = vpop.f32.mrb[60].mxu1 }
 0x3e1   :  { %v1438_v30 = vpack.c.bf16 %v1420_v18, %v1418_v16  ;;  %v1354_v39 = vadd.f32 %v1353_v27, %v2833_v63  ;;  %v1355_v40 = vpop.f32.mrb[61].mxu1 }
 0x3e2   :  { %v1439_v41 = vpack.c.bf16 %v1421_v17, %v1419_v29  ;;  %v1356_v47 = vadd.f32 %v1355_v40, %v2836_v10  ;;  %v1357_v42 = vpop.f32.mrb[62].mxu1 }
 0x3e3   :  { %v1390_v43 = vmax.f32 %v1354_v39, 0.0  ;;  %v1358_v60 = vadd.f32 %v1357_v42, %v2833_v63  ;;  %v1359_v44 = vpop.f32.mrb[63].mxu1  ;;  %v2089_v63 = vld [vmem:[%s3053_s1 + $0x1d0] ss:$8 sps:$4 sm:$0xff]  }
 0x3e4   :  { %v1391_v19 = vmax.f32 %v1356_v47, 0.0  ;;  %v1360_v46 = vadd.f32 %v1359_v44, %v2836_v10  ;;  %1993 = vmatprep.mubr.msk.bf16.mxu0 %vm556_vm2, %v1439_v41  ;;  %2037 = vmatpush3.bf16.msra.mxu1 %v2089_v63  ;;  %v2090_v10 = vld [vmem:[%s3053_s1 + $0x1e0] ss:$8 sps:$4 sm:$0xff]  }
 0x3e5   :  { %v1392_v28 = vmax.f32 %v1358_v60, 0.0  ;;  %1607 = vmatmul.mubr.bf16.gmra.mrb[72].mxu0 %v1438_v30  ;;  %v1422_v23 = vmin.f32 %v1390_v43, 6.0  ;;  %2038 = vmatprep.subr.bf16.mxu1 %v2117_v7  ;;  %v2934_v30 = vld [vmem:[%s3054_s2 + $0x17] ss:$0 sm:$0xff] }
 0x3e6   :  { %v1393_v48 = vmax.f32 %v1360_v46, 0.0  ;;  %v1423_v50 = vmin.f32 %v1391_v19, 6.0 }
 0x3e7   :  { %v1424_v24 = vmin.f32 %v1392_v28, 6.0 }
 0x3e8   :  { %v1425_v32 = vmin.f32 %v1393_v48, 6.0  ;;  %2039 = vmatpush3.bf16.msra.mxu1 %v2090_v10 }
 0x3e9   :  { %v1440_v21 = vpack.c.bf16 %v1424_v24, %v1422_v23  ;;  %2040 = vmatprep.subr.bf16.mxu1 %v2117_v7  ;;  %v1017_v7 = vld [vmem:[%s3054_s2 + $0x10] sm:$0x70] }
 0x3ea   :  { %v1441_v56 = vpack.c.bf16 %v1425_v32, %v1423_v50  ;;  %v2905_v1 = vrot.slane %v1017_v7, %v728_v9  ;;  %v2909_v59 = vrot.slane %v1017_v7, %v748_v12  ;;  %v2916_v25 = vrot.slane %v1017_v7, %v784_v14 }
 0x3ec   :  { %1994 = vmatprep.mubr.msk.bf16.mxu0 %vm556_vm2, %v1441_v56  ;;  %2041 = vmatpush3.bf16.msra.mxu1 %v1858_v52  ;;  %v1675_v9 = vmul.f32 %v2905_v1, %v2693_v34 }
 0x3ed   :  { %1615 = vmatmul.mubr.bf16.gmra.mrb[76].mxu0 %v1440_v21 }
 0x488   :  { %v1560_v33 = vpop.f32.mrb[48].mxu0 }
 0x489   :  { %v1561_v54 = vadd.f32 %v1560_v33, %v2894_v35  ;;  %v1562_v55 = vpop.f32.mrb[49].mxu0 }
 0x48a   :  { %v1563_v57 = vpop.f32.mrb[50].mxu0 }
 0x48b   :  { %1623 = vst.msk [vmem:[#allocation2 + $0x8] sm:$0xff] %vm16_vm0, %v1561_v54  ;;  %v1564_v37 = vadd.f32 %v1563_v57, %v2894_v35  ;;  %v1565_v58 = vpop.f32.mrb[51].mxu0  ;;  %v1695_v12 = vmul.f32 %v2909_v59, %v1561_v54 }
 0x48d   :  { %1624 = vst.msk [vmem:[#allocation2 + $0x10] sm:$0xff] %vm16_vm0, %v1564_v37  ;;  %v1711_v49 = vadd.f32 %v1695_v12, %v1675_v9  ;;  %v1696_v5 = vmul.f32 %v2909_v59, %v1564_v37 }
 0x490   :  { %v1568_v0 = vpop.f32.mrb[52].mxu0 }
 0x491   :  { %v1569_v36 = vadd.f32 %v1568_v0, %v2894_v35  ;;  %v1570_v61 = vpop.f32.mrb[53].mxu0 }
 0x492   :  { %v1571_v62 = vpop.f32.mrb[54].mxu0  ;;  %v1640_v53 = vld [vmem:[#allocation2 + $0x8] sm:$0xff] }
 0x493   :  { %1625 = vst.msk [vmem:[#allocation2 + $0x18] sm:$0xff] %vm16_vm0, %v1569_v36  ;;  %v1572_v11 = vadd.f32 %v1571_v62, %v2894_v35  ;;  %v1573_v2 = vpop.f32.mrb[55].mxu0  ;;  %v1676_v26 = vmul.f32 %v2905_v1, %v1640_v53  ;;  %v1697_v6 = vmul.f32 %v2909_v59, %v1569_v36 }
 0x494   :  { %v1641_v3 = vld [vmem:[#allocation2 + $0x10] sm:$0xff] }
 0x495   :  { %1626 = vst.msk [vmem:[#allocation2 + $0x20] sm:$0xff] %vm16_vm0, %v1572_v11  ;;  %v1731_v22 = vmul.f32 %v2916_v25, %v1641_v3  ;;  %v1677_v31 = vmul.f32 %v2905_v1, %v1641_v3  ;;  %v1712_v17 = vadd.f32 %v1696_v5, %v1676_v26  ;;  %v1698_v23 = vmul.f32 %v2909_v59, %v1572_v11 }
 0x496   :  { %v1738_v3 = vmul.f32 %v2916_v25, %v2725_v45 }
 0x497   :  { %v1747_v29 = vadd.f32 %v1731_v22, %v1711_v49  ;;  %v1713_v39 = vadd.f32 %v1697_v6, %v1677_v31 }
 0x498   :  { %v1576_v4 = vpop.f32.mrb[56].mxu0 }
 0x499   :  { %v1577_v8 = vadd.f32 %v1576_v4, %v2894_v35  ;;  %v1578_v14 = vpop.f32.mrb[57].mxu0  ;;  %v1763_v42 = vadd.f32 %v1747_v29, %v2934_v30 }
 0x49a   :  { %v1642_v15 = vld [vmem:[#allocation2 + $0x18] sm:$0xff]  ;;  %v1579_v34 = vpop.f32.mrb[58].mxu0 }
 0x49b   :  { %1627 = vst.msk [vmem:[#allocation2 + $0x28] sm:$0xff] %vm16_vm0, %v1577_v8  ;;  %v1580_v13 = vadd.f32 %v1579_v34, %v2894_v35  ;;  %v1581_v16 = vpop.f32.mrb[59].mxu0  ;;  %v1732_v18 = vmul.f32 %v2916_v25, %v1642_v15  ;;  %v1678_v43 = vmul.f32 %v2905_v1, %v1642_v15  ;;  %v1699_v21 = vmul.f32 %v2909_v59, %v1577_v8 }
 0x49c   :  { %v1643_v27 = vld [vmem:[#allocation2 + $0x20] sm:$0xff]  ;;  %v1779_v10 = vsel %vm16_vm0, %v1763_v42, 0.0 }
 0x49d   :  { %1628 = vst.msk [vmem:[#allocation2 + $0x30] sm:$0xff] %vm16_vm0, %v1580_v13  ;;  %v1733_v40 = vmul.f32 %v2916_v25, %v1643_v27  ;;  %v1748_v41 = vadd.f32 %v1732_v18, %v1712_v17  ;;  %v1679_v19 = vmul.f32 %v2905_v1, %v1643_v27  ;;  %v1714_v52 = vadd.f32 %v1698_v23, %v1678_v43 }
 0x49e   :  { %v1700_v61 = vmul.f32 %v2909_v59, %v1580_v13  ;;  %v1683_v23 = vmul.f32 %v2905_v1, %v2760_v20 }
 0x49f   :  { %v1749_v47 = vadd.f32 %v1733_v40, %v1713_v39  ;;  %v1764_v44 = vadd.f32 %v1748_v41, %v2934_v30  ;;  %v1715_v57 = vadd.f32 %v1699_v21, %v1679_v19 }
 0x4a0   :  { %v1584_v60 = vpop.f32.mrb[60].mxu0 }
 0x4a1   :  { %v1585_v46 = vadd.f32 %v1584_v60, %v2894_v35  ;;  %v1586_v28 = vpop.f32.mrb[61].mxu0  ;;  %v1765_v48 = vadd.f32 %v1749_v47, %v2934_v30  ;;  %v1780_v32 = vsel %vm16_vm0, %v1764_v44, 0.0 }
 0x4a2   :  { %v1644_v24 = vld [vmem:[#allocation2 + $0x28] sm:$0xff]  ;;  %v1587_v50 = vpop.f32.mrb[62].mxu0  ;;  %v1781_v54 = vadd.f32 %v1780_v32, %v1779_v10 }
 0x4a3   :  { %1629 = vst.msk [vmem:[#allocation2 + $0x38] sm:$0xff] %vm16_vm0, %v1585_v46  ;;  %v1588_v56 = vadd.f32 %v1587_v50, %v2894_v35  ;;  %v1734_v63 = vmul.f32 %v2916_v25, %v1644_v24  ;;  %v1589_v51 = vpop.f32.mrb[63].mxu0  ;;  %v1782_v55 = vsel %vm16_vm0, %v1765_v48, 0.0  ;;  %v1680_v58 = vmul.f32 %v2905_v1, %v1644_v24 }
 0x4a4   :  { %v1645_v33 = vld [vmem:[#allocation2 + $0x30] sm:$0xff]  ;;  %v1783_v0 = vadd.f32 %v1782_v55, %v1781_v54  ;;  %v1701_v26 = vmul.f32 %v2909_v59, %v1585_v46 }
 0x4a5   :  { %1630 = vst.msk [vmem:[#allocation2 + $0x40] sm:$0xff] %vm16_vm0, %v1588_v56  ;;  %v1735_v37 = vmul.f32 %v2916_v25, %v1645_v33  ;;  %v1750_v7 = vadd.f32 %v1734_v63, %v1714_v52  ;;  %v1681_v62 = vmul.f32 %v2905_v1, %v1645_v33  ;;  %v1716_v22 = vadd.f32 %v1700_v61, %v1680_v58 }
 0x4a6   :  { %v1702_v49 = vmul.f32 %v2909_v59, %v1588_v56 }
 0x4a7   :  { %v1751_v36 = vadd.f32 %v1735_v37, %v1715_v57  ;;  %v1766_v11 = vadd.f32 %v1750_v7, %v2934_v30  ;;  %v1717_v6 = vadd.f32 %v1701_v26, %v1681_v62 }
 0x4a8   :  { %v1592_v2 = vpop.f32.mrb[64].mxu0 }
 0x4a9   :  { %v1767_v9 = vadd.f32 %v1751_v36, %v2934_v30  ;;  %v1593_v12 = vadd.f32 %v1592_v2, %v2894_v35  ;;  %v1594_v53 = vpop.f32.mrb[65].mxu0  ;;  %v1784_v31 = vsel %vm16_vm0, %v1766_v11, 0.0 }
 0x4aa   :  { %v1646_v4 = vld [vmem:[#allocation2 + $0x38] sm:$0xff]  ;;  %v1595_v8 = vpop.f32.mrb[66].mxu0  ;;  %v1785_v15 = vadd.f32 %v1784_v31, %v1783_v0 }
 0x4ab   :  { %v1682_v14 = vmul.f32 %v2905_v1, %v1646_v4  ;;  %v1736_v5 = vmul.f32 %v2916_v25, %v1646_v4  ;;  %v1786_v45 = vsel %vm16_vm0, %v1767_v9, 0.0  ;;  %1631 = vst.msk [vmem:[#allocation2 + $0x58] sm:$0xff] %vm16_vm0, %v1593_v12  ;;  %v1597_v34 = vpop.f32.mrb[67].mxu0  ;;  %v1596_v16 = vadd.f32 %v1595_v8, %v2894_v35 }
 0x4ac   :  { %v1661_v13 = vld [vmem:[#allocation2 + $0x40] sm:$0xff]  ;;  %v1787_v27 = vadd.f32 %v1786_v45, %v1785_v15  ;;  %v1703_v24 = vmul.f32 %v2909_v59, %v1593_v12 }
 0x4ad   :  { %v1718_v18 = vadd.f32 %v1702_v49, %v1682_v14  ;;  %v1737_v29 = vmul.f32 %v2916_v25, %v1661_v13  ;;  %v1752_v17 = vadd.f32 %v1736_v5, %v1716_v22  ;;  %1632 = vst.msk [vmem:[#allocation2 + $0x60] sm:$0xff] %vm16_vm0, %v1596_v16  ;;  %v1704_v55 = vmul.f32 %v2909_v59, %v1596_v16 }
 0x4ae   :  { %v1719_v33 = vadd.f32 %v1703_v24, %v1683_v23 }
 0x4af   :  { %v1753_v39 = vadd.f32 %v1737_v29, %v1717_v6  ;;  %v1754_v40 = vadd.f32 %v1738_v3, %v1718_v18  ;;  %v1768_v41 = vadd.f32 %v1752_v17, %v2934_v30 }
 0x4b0   :  { %v1600_v47 = vpop.f32.mrb[68].mxu0 }
 0x4b1   :  { %v1769_v42 = vadd.f32 %v1753_v39, %v2934_v30  ;;  %v1770_v43 = vadd.f32 %v1754_v40, %v2934_v30  ;;  %v1788_v60 = vsel %vm16_vm0, %v1768_v41, 0.0  ;;  %v1601_v44 = vadd.f32 %v1600_v47, %v2894_v35  ;;  %v1602_v19 = vpop.f32.mrb[69].mxu0 }
 0x4b2   :  { %v1789_v46 = vadd.f32 %v1788_v60, %v1787_v27  ;;  %v1603_v28 = vpop.f32.mrb[70].mxu0  ;;  %v1648_v21 = vld [vmem:[#allocation2 + $0x58] sm:$0xff] }
 0x4b3   :  { %v1790_v48 = vsel %vm16_vm0, %v1769_v42, 0.0  ;;  %1633 = vst.msk [vmem:[#allocation2 + $0x68] sm:$0xff] %vm16_vm0, %v1601_v44  ;;  %v1605_v50 = vpop.f32.mrb[71].mxu0  ;;  %v1604_v56 = vadd.f32 %v1603_v28, %v2894_v35  ;;  %v1792_v63 = vsel %vm16_vm0, %v1770_v43, 0.0  ;;  %v1684_v20 = vmul.f32 %v2905_v1, %v1648_v21 }
 0x4b4   :  { %v1791_v32 = vadd.f32 %v1790_v48, %v1789_v46  ;;  %v1649_v10 = vld [vmem:[#allocation2 + $0x60] sm:$0xff]  ;;  %v1705_v3 = vmul.f32 %v2909_v59, %v1601_v44  ;;  %v1746_v50 = vmul.f32 %v2916_v25, %v2786_v38 }
 0x4b5   :  { %1634 = vst.msk [vmem:[#allocation2 + $0x70] sm:$0xff] %vm16_vm0, %v1604_v56  ;;  %v1739_v52 = vmul.f32 %v2916_v25, %v1649_v10  ;;  %v1685_v7 = vmul.f32 %v2905_v1, %v1649_v10  ;;  %v1720_v61 = vadd.f32 %v1704_v55, %v1684_v20  ;;  %v1706_v6 = vmul.f32 %v2909_v59, %v1604_v56 }
 0x4b6   :  { %v2984_v51 = vadd.f32 %v1792_v63, %v1791_v32 }
 0x4b7   :  { %v1755_v58 = vadd.f32 %v1739_v52, %v1719_v33  ;;  %v1721_v22 = vadd.f32 %v1705_v3, %v1685_v7 }
 0x4b8   :  { %v1608_v54 = vpop.f32.mrb[72].mxu0  ;;  %v1794_v48 = vrot.slane %v2984_v51, 4 }
 0x4b9   :  { %v1609_v57 = vadd.f32 %v1608_v54, %v2894_v35  ;;  %v1610_v37 = vpop.f32.mrb[73].mxu0  ;;  %v1771_v53 = vadd.f32 %v1755_v58, %v2934_v30 }
 0x4ba   :  { %v1650_v0 = vld [vmem:[#allocation2 + $0x68] sm:$0xff]  ;;  %v1611_v36 = vpop.f32.mrb[74].mxu0 }
 0x4bb   :  { %1635 = vst.msk [vmem:[#allocation2 + $0x78] sm:$0xff] %vm16_vm0, %v1609_v57  ;;  %v1612_v62 = vadd.f32 %v1611_v36, %v2894_v35  ;;  %v1613_v11 = vpop.f32.mrb[75].mxu0  ;;  %v1740_v2 = vmul.f32 %v2916_v25, %v1650_v0  ;;  %v1686_v49 = vmul.f32 %v2905_v1, %v1650_v0  ;;  %v1800_v45 = vsel %vm16_vm0, %v1771_v53, 0.0 }
 0x4bc   :  { %v1651_v9 = vld [vmem:[#allocation2 + $0x70] sm:$0xff]  ;;  %v1707_v17 = vmul.f32 %v2909_v59, %v1609_v57  ;;  %v1795_v57 = vadd.f32 %v1794_v48, %v2984_v51 }
 0x4bd   :  { %1636 = vst.msk [vmem:[#allocation2 + $0x80] sm:$0xff] %vm16_vm0, %v1612_v62  ;;  %v1756_v12 = vadd.f32 %v1740_v2, %v1720_v61  ;;  %v1741_v26 = vmul.f32 %v2916_v25, %v1651_v9  ;;  %v1687_v14 = vmul.f32 %v2905_v1, %v1651_v9  ;;  %v1722_v41 = vadd.f32 %v1706_v6, %v1686_v49 }
 0x4be   :  { %v1796_v11 = vrot.slane %v1795_v57, 2 }
 0x4bf   :  { %v1772_v4 = vadd.f32 %v1756_v12, %v2934_v30  ;;  %v1757_v8 = vadd.f32 %v1741_v26, %v1721_v22  ;;  %v1723_v43 = vadd.f32 %v1707_v17, %v1687_v14  ;;  %v1829_v17 = vld [vmem:[%s3054_s2 + $0x25] ss:$0 sm:$0xff] }
 0x4c0   :  { %v1616_v31 = vpop.f32.mrb[76].mxu0  ;;  %v1797_v12 = vadd.f32 %v1796_v11, %v1795_v57 }
 0x4c1   :  { %v1617_v5 = vadd.f32 %v1616_v31, %v2894_v35  ;;  %v1618_v15 = vpop.f32.mrb[77].mxu0  ;;  %v1801_v34 = vsel %vm16_vm0, %v1772_v4, 0.0  ;;  %v1773_v18 = vadd.f32 %v1757_v8, %v2934_v30 }
 0x4c2   :  { %v1652_v13 = vld [vmem:[#allocation2 + $0x78] sm:$0xff]  ;;  %v1619_v16 = vpop.f32.mrb[78].mxu0  ;;  %v1802_v29 = vadd.f32 %v1801_v34, %v1800_v45  ;;  %v1798_v26 = vrot.slane %v1797_v12, 1 }
 0x4c3   :  { %1637 = vst.msk [vmem:[#allocation2 + $0x88] sm:$0xff] %vm16_vm0, %v1617_v5  ;;  %v1620_v27 = vadd.f32 %v1619_v16, %v2894_v35  ;;  %v1742_v39 = vmul.f32 %v2916_v25, %v1652_v13  ;;  %v1621_v40 = vpop.f32.mrb[79].mxu0  ;;  %v1803_v42 = vsel %vm16_vm0, %v1773_v18, 0.0  ;;  %v1688_v44 = vmul.f32 %v2905_v1, %v1652_v13 }
 0x4c4   :  { %v1653_v47 = vld [vmem:[#allocation2 + $0x80] sm:$0xff]  ;;  %v1804_v46 = vadd.f32 %v1803_v42, %v1802_v29  ;;  %v1708_v35 = vmul.f32 %v2909_v59, %v1612_v62  ;;  %v1709_v56 = vmul.f32 %v2909_v59, %v1617_v5  ;;  %v1799_v31 = vadd.f32 %v1798_v26, %v1797_v12 }
 0x4c5   :  { %1638 = vst.msk [vmem:[#allocation2 + $0x90] sm:$0xff] %vm16_vm0, %v1620_v27  ;;  %v1743_v60 = vmul.f32 %v2916_v25, %v1653_v47  ;;  %v1758_v19 = vadd.f32 %v1742_v39, %v1722_v41  ;;  %v1689_v23 = vmul.f32 %v2905_v1, %v1653_v47  ;;  %v1710_v10 = vmul.f32 %v2909_v59, %v1620_v27 }
 0x4c6   :  { %v1724_v21 = vadd.f32 %v1708_v35, %v1688_v44  ;;  %v1822_v5 = vmul.f32 0.015625, %v1799_v31 }
 0x4c7   :  { %v1759_v28 = vadd.f32 %v1743_v60, %v1723_v43  ;;  %v1774_v24 = vadd.f32 %v1758_v19, %v2934_v30  ;;  %v1725_v38 = vadd.f32 %v1709_v56, %v1689_v23 }
 0x4c9   :  { %v1775_v32 = vadd.f32 %v1759_v28, %v2934_v30  ;;  %v1805_v52 = vsel %vm16_vm0, %v1774_v24, 0.0 }
 0x4ca   :  { %v1654_v63 = vld [vmem:[#allocation2 + $0x88] sm:$0xff]  ;;  %v1806_v54 = vadd.f32 %v1805_v52, %v1804_v46 }
 0x4cb   :  { %v1690_v33 = vmul.f32 %v2905_v1, %v1654_v63  ;;  %v1744_v20 = vmul.f32 %v2916_v25, %v1654_v63  ;;  %v1807_v55 = vsel %vm16_vm0, %v1775_v32, 0.0 }
 0x4cc   :  { %v1669_v37 = vld [vmem:[#allocation2 + $0x90] sm:$0xff]  ;;  %v1808_v36 = vadd.f32 %v1807_v55, %v1806_v54 }
 0x4cd   :  { %v1726_v58 = vadd.f32 %v1710_v10, %v1690_v33  ;;  %v1745_v7 = vmul.f32 %v2916_v25, %v1669_v37  ;;  %v1760_v0 = vadd.f32 %v1744_v20, %v1724_v21 }
 0x4cf   :  { %v1761_v61 = vadd.f32 %v1745_v7, %v1725_v38  ;;  %v1762_v59 = vadd.f32 %v1746_v50, %v1726_v58  ;;  %v1776_v62 = vadd.f32 %v1760_v0, %v2934_v30 }
 0x4d1   :  { %v1777_v1 = vadd.f32 %v1761_v61, %v2934_v30  ;;  %v1778_v2 = vadd.f32 %v1762_v59, %v2934_v30  ;;  %v1809_v3 = vsel %vm16_vm0, %v1776_v62, 0.0  ;;  %v1830_v30 = vpack.c.bf16 %v1822_v5, %v1822_v5 }
 0x4d2   :  { %v1810_v9 = vadd.f32 %v1809_v3, %v1808_v36 }
 0x4d3   :  { %v1811_v51 = vsel %vm16_vm0, %v1777_v1, 0.0  ;;  %v1813_v25 = vsel %vm16_vm0, %v1778_v2, 0.0  ;;  %v1834_v13 = vunpack.c.l.b16 %v1830_v30 }
 0x4d4   :  { %v1812_v53 = vadd.f32 %v1811_v51, %v1810_v9 }
 0x4d6   :  { %v1814_v22 = vadd.f32 %v1813_v25, %v1812_v53 }
 0x4d8   :  { %v1815_v4 = vrot.slane %v1814_v22, 4 }
 0x4da   :  { %v1816_v49 = vadd.f32 %v1815_v4, %v1814_v22 }
 0x4dc   :  { %v1817_v8 = vrot.slane %v1816_v49, 2 }
 0x4de   :  { %v1818_v14 = vadd.f32 %v1817_v8, %v1816_v49 }
 0x4e0   :  { %v1819_v15 = vrot.slane %v1818_v14, 1 }
 0x4e2   :  { %v1820_v45 = vadd.f32 %v1819_v15, %v1818_v14 }
 0x4e4   :  { %v1823_v34 = vmul.f32 0.015625, %v1820_v45 }
 0x4e6   :  { %v1831_v6 = vpack.c.bf16 %v1823_v34, %v1823_v34 }
 0x4e8   :  { %v1835_v16 = vunpack.c.l.b16 %v1831_v6 }
 0x4ea   :  { %v1837_v18 = vsel %vm1836_vm4, %v1835_v16, %v1834_v13 }
 0x4eb   :  { %v1838_v29 = vpack.c.b16 %v1837_v18, %v1837_v18 }
 0x4ed   :  { %2043 = vmatmul.mubr.msk.bf16.vlgmr.msra.gmra.mrb[64].mxu1 %vm16_vm0, %v1838_v29 }
 0x5c0   :  { %v1894_v27 = vpop.f32.mrb[64].mxu1 }
 0x5c1   :  { %v1895_v39 = vadd.f32 %v1894_v27, %v1829_v17  ;;  %v2044_v40 = vpop.f32.mrb[65].mxu1 }
 0x5c2   :  { %v1897_v41 = vpop.f32.mrb[66].mxu1 }
 0x5c3   :  { %v2045_v47 = vpop.f32.mrb[67].mxu1  ;;  %1901 = vst.msk [vmem:[#allocation3] sm:$0x3] %vm1900_vm5, %v1895_v39 }
 0x5c4   :  { %2103 = shalt.err (!%p2100_p4)
}
 0x5c5   :  { %s2104_s2 = scalar_lea.hbm %s3055_s3, 32 }
 0x5c6   :  { %p2105_p5 = scmp.ne.s32.totalorder %s3055_s3, %s2104_s2  ;;  %p2108_p6 = scmp.lt.u32.totalorder %s2104_s2, %s3055_s3 }
 0x5c8   :  { %p2110_p7 = pnand %p2108_p6, %p2105_p5 }
 0x5ca   :  { %2113 = shalt.err (!%p2110_p7)
}
 0x5cb   :  { %1911 = dma.vmem_to_hbm [thread:$0]  %s1909_s5, 32, %s3055_s3, [#allocation4]  }
 0x5cc   :  { %2114 = dma.done.wait [#allocation4], 32  }
 0x5cd   :  { %2115 = vsyncadd [#allocation4], 4294967264 }
 0x5ce   :  { %1915 = vsyncpa [#allocation4], 1 }

</bundles_post_ra>
